<compile_context>
chip_gen: v6e
topology: v6e:2x2x1
jax: 0.10.0
libtpu: 0.0.40
codegen_flags: <defaults>
</compile_context>

<pallas_src>
import functools

import jax
import jax.numpy as jnp
from jax.experimental import pallas as pl
from jax.experimental.pallas import tpu as pltpu

# Small synthetic BERT config (module implies hidden_dim -> Linear(hidden, 1) -> squeeze(-1)).
VOCAB = 100
TYPE_VOCAB = 2
MAX_POS = 16
HIDDEN = 32
NUM_HEADS = 4
HEAD_DIM = HIDDEN // NUM_HEADS
INTERMEDIATE = 64
NUM_LAYERS = 2
BATCH = 2
SEQ = 8
LN_EPS = 1e-12

_VMEM = pl.BlockSpec(memory_space=pltpu.MemorySpace.VMEM)


def _layernorm(x, g, b, eps):
    mu = jnp.mean(x, axis=-1, keepdims=True)
    var = jnp.mean(jnp.square(x - mu), axis=-1, keepdims=True)
    return (x - mu) * jax.lax.rsqrt(var + eps) * g + b


# ----------------------------- Fused Pallas kernel -----------------------------

def _bert_fused_kernel(ids_ref, tids_ref, mask_ref,
                       we_ref, pe_ref, te_ref, eg_ref, eb_ref,
                       qkv_w_ref, qkv_b_ref, ow_ref, ob_ref,
                       ln1_g_ref, ln1_b_ref, iw_ref, ib_ref, fw_ref, fb_ref,
                       ln2_g_ref, ln2_b_ref,
                       pw_ref, pb_ref, cw_ref, cb_ref,
                       o_ref,
                       *, num_layers, num_heads, head_dim, batch, seq, eps, scale):
    bs = batch * seq
    hidden = num_heads * head_dim

    # ---- Embeddings: in-kernel gathers as one-hot matmuls, sum + LayerNorm ----
    ids = ids_ref[...]                                                   # [BS, 1] int32
    tids = tids_ref[...]                                                 # [BS, 1] int32
    word_oh = (ids == jax.lax.broadcasted_iota(jnp.int32, (bs, VOCAB), 1)).astype(jnp.float32)
    type_oh = (tids == jax.lax.broadcasted_iota(jnp.int32, (bs, TYPE_VOCAB), 1)).astype(jnp.float32)
    word_e = jnp.dot(word_oh, we_ref[...], preferred_element_type=jnp.float32)   # [BS, H]
    type_e = jnp.dot(type_oh, te_ref[...], preferred_element_type=jnp.float32)   # [BS, H]
    pos = pe_ref[0:seq, :]                                               # [S, H]
    pos_e = jnp.concatenate([pos] * batch, axis=0)                       # [BS, H]
    h = _layernorm(word_e + pos_e + type_e, eg_ref[...], eb_ref[...], eps)       # [BS, H]

    # Additive attention mask rows, built once from the raw [B, S] mask (VPU).
    mask_add = (1.0 - mask_ref[...].astype(jnp.float32)) * -1e9          # [B, S]

    # ---- Encoder layers (statically unrolled; weights stacked [L, ...], resident in VMEM) ----
    for l in range(num_layers):
        # Fused QKV projection over all batch rows at once.
        qkv = jnp.dot(h, qkv_w_ref[l], preferred_element_type=jnp.float32) + qkv_b_ref[l]  # [BS, 3H]

        ctx_rows = []
        for b in range(batch):
            rows = slice(b * seq, (b + 1) * seq)
            q_b = qkv[rows, 0:hidden]                                    # [S, H]
            k_b = qkv[rows, hidden:2 * hidden]                           # [S, H]
            v_b = qkv[rows, 2 * hidden:3 * hidden]                       # [S, H]
            k_t = k_b.T                                                  # one transpose per (layer, batch)
            m_b = mask_add[b:b + 1, :]                                   # [1, S]

            heads = []
            for hd in range(num_heads):
                lo, hi = hd * head_dim, (hd + 1) * head_dim
                s = jnp.dot(q_b[:, lo:hi], k_t[lo:hi, :],
                            preferred_element_type=jnp.float32)          # [S, S]
                s = s * scale + m_b
                s = s - jnp.max(s, axis=-1, keepdims=True)
                p = jnp.exp(s)
                p = p / jnp.sum(p, axis=-1, keepdims=True)               # exact softmax
                heads.append(jnp.dot(p, v_b[:, lo:hi],
                                     preferred_element_type=jnp.float32))  # [S, DH]
            ctx_rows.append(jnp.concatenate(heads, axis=-1))             # [S, H] contiguous slab

        ctx = jnp.concatenate(ctx_rows, axis=0)                          # [BS, H]
        # Single output projection over all heads / batch rows.
        attn = jnp.dot(ctx, ow_ref[l], preferred_element_type=jnp.float32) + ob_ref[l]

        h1 = _layernorm(attn + h, ln1_g_ref[l], ln1_b_ref[l], eps)

        ffn = jnp.dot(h1, iw_ref[l], preferred_element_type=jnp.float32) + ib_ref[l]     # [BS, I]
        # TODO(synk): original BERT uses exact erf-GELU; tanh approximation used here.
        ffn = jax.nn.gelu(ffn, approximate=True)
        ffn_out = jnp.dot(ffn, fw_ref[l], preferred_element_type=jnp.float32) + fb_ref[l]  # [BS, H]

        h = _layernorm(ffn_out + h1, ln2_g_ref[l], ln2_b_ref[l], eps)

    # ---- Pooler (tanh on [CLS]) + classifier Linear(H, 1) epilogue ----
    cls = jnp.concatenate([h[b * seq:b * seq + 1, :] for b in range(batch)], axis=0)   # [B, H]
    pooled = jnp.tanh(jnp.dot(cls, pw_ref[...], preferred_element_type=jnp.float32) + pb_ref[...])
    # Linear(H, 1) as a VPU reduction (avoids an N=1 MXU push); lane-sparse [B,1] store is
    # unavoidable for the scalar head and negligible.
    logits = jnp.sum(pooled * cw_ref[...], axis=-1, keepdims=True) + cb_ref[...]        # [B, 1]
    o_ref[...] = logits.astype(o_ref.dtype)


# ----------------------------- Wrapper -----------------------------

def bert_classifier_forward(params, input_ids, token_type_ids, attention_mask):
    B, S = input_ids.shape

    kernel = functools.partial(
        _bert_fused_kernel,
        num_layers=NUM_LAYERS, num_heads=NUM_HEADS, head_dim=HEAD_DIM,
        batch=B, seq=S, eps=LN_EPS, scale=1.0 / (HEAD_DIM ** 0.5))

    args = (
        input_ids.reshape(B * S, 1).astype(jnp.int32),
        token_type_ids.reshape(B * S, 1).astype(jnp.int32),
        attention_mask.astype(jnp.float32),
        params["word_emb"], params["pos_emb"], params["type_emb"],
        params["emb_ln_g"], params["emb_ln_b"],
        params["qkv_w"], params["qkv_b"], params["o_w"], params["o_b"],
        params["ln1_g"], params["ln1_b"], params["i_w"], params["i_b"],
        params["f_w"], params["f_b"], params["ln2_g"], params["ln2_b"],
        params["pooler_w"], params["pooler_b"], params["cls_w"], params["cls_b"],
    )

    logits = pl.pallas_call(
        kernel,
        out_shape=jax.ShapeDtypeStruct((B, 1), jnp.float32),
        in_specs=[_VMEM] * len(args),
        out_specs=_VMEM,
    )(*args)
    return logits.reshape(B)    # .squeeze(-1)


# ----------------------------- Parameters -----------------------------

def init_params(key):
    def nrm(k, shape, scale=0.02):
        return (scale * jax.random.normal(k, shape)).astype(jnp.float32)

    keys = jax.random.split(key, 6)
    lkeys = jax.random.split(keys[5], NUM_LAYERS * 4)

    def lk(i, j):
        return lkeys[i * 4 + j]

    L, H, I = NUM_LAYERS, HIDDEN, INTERMEDIATE
    params = {
        "word_emb": nrm(keys[0], (VOCAB, H)),
        "pos_emb": nrm(keys[1], (MAX_POS, H)),
        "type_emb": nrm(keys[2], (TYPE_VOCAB, H)),
        "emb_ln_g": jnp.ones((1, H), jnp.float32),
        "emb_ln_b": jnp.zeros((1, H), jnp.float32),
        # Per-layer weights stacked along a leading [L, ...] axis (indexed in-kernel).
        "qkv_w": jnp.stack([nrm(lk(i, 0), (H, 3 * H)) for i in range(L)]),
        "qkv_b": jnp.zeros((L, 1, 3 * H), jnp.float32),
        "o_w": jnp.stack([nrm(lk(i, 1), (H, H)) for i in range(L)]),
        "o_b": jnp.zeros((L, 1, H), jnp.float32),
        "ln1_g": jnp.ones((L, 1, H), jnp.float32),
        "ln1_b": jnp.zeros((L, 1, H), jnp.float32),
        "i_w": jnp.stack([nrm(lk(i, 2), (H, I)) for i in range(L)]),
        "i_b": jnp.zeros((L, 1, I), jnp.float32),
        "f_w": jnp.stack([nrm(lk(i, 3), (I, H)) for i in range(L)]),
        "f_b": jnp.zeros((L, 1, H), jnp.float32),
        "ln2_g": jnp.ones((L, 1, H), jnp.float32),
        "ln2_b": jnp.zeros((L, 1, H), jnp.float32),
        "pooler_w": nrm(keys[3], (H, H)),
        "pooler_b": jnp.zeros((1, H), jnp.float32),
        # Linear(H, 1) weight stored as a [1, H] row for the VPU-reduction head.
        "cls_w": nrm(keys[4], (1, H)),
        "cls_b": jnp.zeros((1, 1), jnp.float32),
    }
    return params


if __name__ == "__main__":
    key = jax.random.PRNGKey(0)
    pkey, ikey = jax.random.split(key)
    params = init_params(pkey)

    input_ids = jax.random.randint(ikey, (BATCH, SEQ), 0, VOCAB, dtype=jnp.int32)
    token_type_ids = jnp.zeros((BATCH, SEQ), dtype=jnp.int32)
    attention_mask = jnp.ones((BATCH, SEQ), dtype=jnp.float32)

    out = jax.jit(bert_classifier_forward)(params, input_ids, token_type_ids, attention_mask)
    out = jax.block_until_ready(out)
    assert out.shape == (BATCH,), out.shape
    print("KERNEL_OK")
</pallas_src>

<mosaic_0001>
module attributes {stable_mosaic.version = 11 : i64} {
  func.func @_bert_fused_kernel(%arg0: memref<16x1xi32, #tpu.memory_space<vmem>>, %arg1: memref<16x1xi32, #tpu.memory_space<vmem>>, %arg2: memref<2x8xf32, #tpu.memory_space<vmem>>, %arg3: memref<100x32xf32, #tpu.memory_space<vmem>>, %arg4: memref<16x32xf32, #tpu.memory_space<vmem>>, %arg5: memref<2x32xf32, #tpu.memory_space<vmem>>, %arg6: memref<1x32xf32, #tpu.memory_space<vmem>>, %arg7: memref<1x32xf32, #tpu.memory_space<vmem>>, %arg8: memref<2x32x96xf32, #tpu.memory_space<vmem>>, %arg9: memref<2x1x96xf32, #tpu.memory_space<vmem>>, %arg10: memref<2x32x32xf32, #tpu.memory_space<vmem>>, %arg11: memref<2x1x32xf32, #tpu.memory_space<vmem>>, %arg12: memref<2x1x32xf32, #tpu.memory_space<vmem>>, %arg13: memref<2x1x32xf32, #tpu.memory_space<vmem>>, %arg14: memref<2x32x64xf32, #tpu.memory_space<vmem>>, %arg15: memref<2x1x64xf32, #tpu.memory_space<vmem>>, %arg16: memref<2x64x32xf32, #tpu.memory_space<vmem>>, %arg17: memref<2x1x32xf32, #tpu.memory_space<vmem>>, %arg18: memref<2x1x32xf32, #tpu.memory_space<vmem>>, %arg19: memref<2x1x32xf32, #tpu.memory_space<vmem>>, %arg20: memref<32x32xf32, #tpu.memory_space<vmem>>, %arg21: memref<1x32xf32, #tpu.memory_space<vmem>>, %arg22: memref<1x32xf32, #tpu.memory_space<vmem>>, %arg23: memref<1x1xf32, #tpu.memory_space<vmem>>, %arg24: memref<2x1xf32, #tpu.memory_space<vmem>>) attributes {dimension_semantics = [], scalar_prefetch = 0 : i64, scratch_operands = 0 : i64, tpu.core_type = #tpu.core_type<tc>} {
    %c0 = arith.constant 0 : index
    %c0_0 = arith.constant 0 : index
    %0 = vector.load %arg0[%c0, %c0_0] : memref<16x1xi32, #tpu.memory_space<vmem>>, vector<16x1xi32>
    %c0_1 = arith.constant 0 : index
    %c0_2 = arith.constant 0 : index
    %1 = vector.load %arg1[%c0_1, %c0_2] : memref<16x1xi32, #tpu.memory_space<vmem>>, vector<16x1xi32>
    %2 = tpu.iota {dimensions = array<i32: 1>} : vector<16x100xi32>
    %3 = vector.broadcast %0 : vector<16x1xi32> to vector<16x100xi32>
    %4 = arith.cmpi eq, %3, %2 : vector<16x100xi32>
    %5 = arith.extui %4 : vector<16x100xi1> to vector<16x100xi32>
    %6 = arith.sitofp %5 : vector<16x100xi32> to vector<16x100xf32>
    %7 = tpu.iota {dimensions = array<i32: 1>} : vector<16x2xi32>
    %8 = vector.broadcast %1 : vector<16x1xi32> to vector<16x2xi32>
    %9 = arith.cmpi eq, %8, %7 : vector<16x2xi32>
    %10 = arith.extui %9 : vector<16x2xi1> to vector<16x2xi32>
    %11 = arith.sitofp %10 : vector<16x2xi32> to vector<16x2xf32>
    %c0_3 = arith.constant 0 : index
    %c0_4 = arith.constant 0 : index
    %12 = vector.load %arg3[%c0_3, %c0_4] : memref<100x32xf32, #tpu.memory_space<vmem>>, vector<100x32xf32>
    %cst = arith.constant dense<0.000000e+00> : vector<16x32xf32>
    %13 = tpu.matmul %6, %12, %cst {dimension_numbers = #tpu.dot_dimension_numbers<[1], [0], [0], [1], [0, 0, 1, 1], [], []>} : vector<16x100xf32>, vector<100x32xf32>, vector<16x32xf32> -> vector<16x32xf32>
    %c0_5 = arith.constant 0 : index
    %c0_6 = arith.constant 0 : index
    %14 = vector.load %arg5[%c0_5, %c0_6] : memref<2x32xf32, #tpu.memory_space<vmem>>, vector<2x32xf32>
    %cst_7 = arith.constant dense<0.000000e+00> : vector<16x32xf32>
    %15 = tpu.matmul %11, %14, %cst_7 {dimension_numbers = #tpu.dot_dimension_numbers<[1], [0], [0], [1], [0, 0, 1, 1], [], []>} : vector<16x2xf32>, vector<2x32xf32>, vector<16x32xf32> -> vector<16x32xf32>
    %c0_8 = arith.constant 0 : index
    %c0_9 = arith.constant 0 : index
    %16 = vector.load %arg4[%c0_8, %c0_9] : memref<16x32xf32, #tpu.memory_space<vmem>>, vector<8x32xf32>
    %17 = tpu.concatenate %16, %16 in 0 : vector<8x32xf32>, vector<8x32xf32> -> vector<16x32xf32>
    %18 = arith.addf %13, %17 : vector<16x32xf32>
    %19 = arith.addf %18, %15 : vector<16x32xf32>
    %c0_10 = arith.constant 0 : index
    %c0_11 = arith.constant 0 : index
    %20 = vector.load %arg6[%c0_10, %c0_11] : memref<1x32xf32, #tpu.memory_space<vmem>>, vector<1x32xf32>
    %c0_12 = arith.constant 0 : index
    %c0_13 = arith.constant 0 : index
    %21 = vector.load %arg7[%c0_12, %c0_13] : memref<1x32xf32, #tpu.memory_space<vmem>>, vector<1x32xf32>
    %cst_14 = arith.constant dense<0.000000e+00> : vector<16xf32>
    %22 = vector.multi_reduction <add>, %19, %cst_14 [1] : vector<16x32xf32> to vector<16xf32>
    %23 = vector.shape_cast %22 : vector<16xf32> to vector<16x1xf32>
    %cst_15 = arith.constant 3.200000e+01 : f32
    %24 = vector.broadcast %cst_15 : f32 to vector<16x1xf32>
    %25 = arith.divf %23, %24 : vector<16x1xf32>
    %26 = vector.broadcast %25 : vector<16x1xf32> to vector<16x32xf32>
    %27 = arith.subf %19, %26 : vector<16x32xf32>
    %28 = arith.mulf %27, %27 : vector<16x32xf32>
    %cst_16 = arith.constant dense<0.000000e+00> : vector<16xf32>
    %29 = vector.multi_reduction <add>, %28, %cst_16 [1] : vector<16x32xf32> to vector<16xf32>
    %30 = vector.shape_cast %29 : vector<16xf32> to vector<16x1xf32>
    %cst_17 = arith.constant 3.200000e+01 : f32
    %31 = vector.broadcast %cst_17 : f32 to vector<16x1xf32>
    %32 = arith.divf %30, %31 : vector<16x1xf32>
    %33 = vector.broadcast %25 : vector<16x1xf32> to vector<16x32xf32>
    %34 = arith.subf %19, %33 : vector<16x32xf32>
    %cst_18 = arith.constant 9.99999996E-13 : f32
    %35 = vector.broadcast %cst_18 : f32 to vector<16x1xf32>
    %36 = arith.addf %32, %35 : vector<16x1xf32>
    %37 = math.rsqrt %36 : vector<16x1xf32>
    %38 = vector.broadcast %37 : vector<16x1xf32> to vector<16x32xf32>
    %39 = arith.mulf %34, %38 : vector<16x32xf32>
    %40 = vector.broadcast %20 : vector<1x32xf32> to vector<16x32xf32>
    %41 = arith.mulf %39, %40 : vector<16x32xf32>
    %42 = vector.broadcast %21 : vector<1x32xf32> to vector<16x32xf32>
    %43 = arith.addf %41, %42 : vector<16x32xf32>
    %c0_19 = arith.constant 0 : index
    %c0_20 = arith.constant 0 : index
    %44 = vector.load %arg2[%c0_19, %c0_20] : memref<2x8xf32, #tpu.memory_space<vmem>>, vector<2x8xf32>
    %cst_21 = arith.constant 1.000000e+00 : f32
    %45 = vector.broadcast %cst_21 : f32 to vector<2x8xf32>
    %46 = arith.subf %45, %44 : vector<2x8xf32>
    %cst_22 = arith.constant -1.000000e+09 : f32
    %47 = vector.broadcast %cst_22 : f32 to vector<2x8xf32>
    %48 = arith.mulf %46, %47 : vector<2x8xf32>
    %c0_23 = arith.constant 0 : index
    %c0_24 = arith.constant 0 : index
    %c0_25 = arith.constant 0 : index
    %49 = vector.load %arg8[%c0_23, %c0_24, %c0_25] : memref<2x32x96xf32, #tpu.memory_space<vmem>>, vector<1x32x96xf32>
    %50 = vector.shape_cast %49 : vector<1x32x96xf32> to vector<32x96xf32>
    %cst_26 = arith.constant dense<0.000000e+00> : vector<16x96xf32>
    %51 = tpu.matmul %43, %50, %cst_26 {dimension_numbers = #tpu.dot_dimension_numbers<[1], [0], [0], [1], [0, 0, 1, 1], [], []>} : vector<16x32xf32>, vector<32x96xf32>, vector<16x96xf32> -> vector<16x96xf32>
    %c0_27 = arith.constant 0 : index
    %c0_28 = arith.constant 0 : index
    %c0_29 = arith.constant 0 : index
    %52 = vector.load %arg9[%c0_27, %c0_28, %c0_29] : memref<2x1x96xf32, #tpu.memory_space<vmem>>, vector<1x1x96xf32>
    %53 = vector.shape_cast %52 : vector<1x1x96xf32> to vector<1x96xf32>
    %54 = vector.broadcast %53 : vector<1x96xf32> to vector<16x96xf32>
    %55 = arith.addf %51, %54 : vector<16x96xf32>
    %56 = vector.extract_strided_slice %55 {offsets = [0, 0], sizes = [8, 32], strides = [1, 1]} : vector<16x96xf32> to vector<8x32xf32>
    %57 = vector.extract_strided_slice %55 {offsets = [0, 32], sizes = [8, 32], strides = [1, 1]} : vector<16x96xf32> to vector<8x32xf32>
    %58 = vector.extract_strided_slice %55 {offsets = [0, 64], sizes = [8, 32], strides = [1, 1]} : vector<16x96xf32> to vector<8x32xf32>
    %59 = tpu.transpose %57, [1, 0] : vector<8x32xf32> -> vector<32x8xf32>
    %60 = vector.extract_strided_slice %48 {offsets = [0, 0], sizes = [1, 8], strides = [1, 1]} : vector<2x8xf32> to vector<1x8xf32>
    %61 = vector.extract_strided_slice %56 {offsets = [0, 0], sizes = [8, 8], strides = [1, 1]} : vector<8x32xf32> to vector<8x8xf32>
    %62 = vector.extract_strided_slice %59 {offsets = [0, 0], sizes = [8, 8], strides = [1, 1]} : vector<32x8xf32> to vector<8x8xf32>
    %cst_30 = arith.constant dense<0.000000e+00> : vector<8x8xf32>
    %63 = tpu.matmul %61, %62, %cst_30 {dimension_numbers = #tpu.dot_dimension_numbers<[1], [0], [0], [1], [0, 0, 1, 1], [], []>} : vector<8x8xf32>, vector<8x8xf32>, vector<8x8xf32> -> vector<8x8xf32>
    %cst_31 = arith.constant 0.353553385 : f32
    %64 = vector.broadcast %cst_31 : f32 to vector<8x8xf32>
    %65 = arith.mulf %63, %64 : vector<8x8xf32>
    %66 = vector.broadcast %60 : vector<1x8xf32> to vector<8x8xf32>
    %67 = arith.addf %65, %66 : vector<8x8xf32>
    %cst_32 = arith.constant dense<0xFF800000> : vector<8xf32>
    %68 = vector.multi_reduction <maximumf>, %67, %cst_32 [1] : vector<8x8xf32> to vector<8xf32>
    %69 = vector.shape_cast %68 : vector<8xf32> to vector<8x1xf32>
    %70 = vector.broadcast %69 : vector<8x1xf32> to vector<8x8xf32>
    %71 = arith.subf %67, %70 : vector<8x8xf32>
    %72 = math.exp %71 : vector<8x8xf32>
    %cst_33 = arith.constant dense<0.000000e+00> : vector<8xf32>
    %73 = vector.multi_reduction <add>, %72, %cst_33 [1] : vector<8x8xf32> to vector<8xf32>
    %74 = vector.shape_cast %73 : vector<8xf32> to vector<8x1xf32>
    %75 = vector.broadcast %74 : vector<8x1xf32> to vector<8x8xf32>
    %76 = arith.divf %72, %75 : vector<8x8xf32>
    %77 = vector.extract_strided_slice %58 {offsets = [0, 0], sizes = [8, 8], strides = [1, 1]} : vector<8x32xf32> to vector<8x8xf32>
    %cst_34 = arith.constant dense<0.000000e+00> : vector<8x8xf32>
    %78 = tpu.matmul %76, %77, %cst_34 {dimension_numbers = #tpu.dot_dimension_numbers<[1], [0], [0], [1], [0, 0, 1, 1], [], []>} : vector<8x8xf32>, vector<8x8xf32>, vector<8x8xf32> -> vector<8x8xf32>
    %79 = vector.extract_strided_slice %56 {offsets = [0, 8], sizes = [8, 8], strides = [1, 1]} : vector<8x32xf32> to vector<8x8xf32>
    %80 = vector.extract_strided_slice %59 {offsets = [8, 0], sizes = [8, 8], strides = [1, 1]} : vector<32x8xf32> to vector<8x8xf32>
    %cst_35 = arith.constant dense<0.000000e+00> : vector<8x8xf32>
    %81 = tpu.matmul %79, %80, %cst_35 {dimension_numbers = #tpu.dot_dimension_numbers<[1], [0], [0], [1], [0, 0, 1, 1], [], []>} : vector<8x8xf32>, vector<8x8xf32>, vector<8x8xf32> -> vector<8x8xf32>
    %cst_36 = arith.constant 0.353553385 : f32
    %82 = vector.broadcast %cst_36 : f32 to vector<8x8xf32>
    %83 = arith.mulf %81, %82 : vector<8x8xf32>
    %84 = vector.broadcast %60 : vector<1x8xf32> to vector<8x8xf32>
    %85 = arith.addf %83, %84 : vector<8x8xf32>
    %cst_37 = arith.constant dense<0xFF800000> : vector<8xf32>
    %86 = vector.multi_reduction <maximumf>, %85, %cst_37 [1] : vector<8x8xf32> to vector<8xf32>
    %87 = vector.shape_cast %86 : vector<8xf32> to vector<8x1xf32>
    %88 = vector.broadcast %87 : vector<8x1xf32> to vector<8x8xf32>
    %89 = arith.subf %85, %88 : vector<8x8xf32>
    %90 = math.exp %89 : vector<8x8xf32>
    %cst_38 = arith.constant dense<0.000000e+00> : vector<8xf32>
    %91 = vector.multi_reduction <add>, %90, %cst_38 [1] : vector<8x8xf32> to vector<8xf32>
    %92 = vector.shape_cast %91 : vector<8xf32> to vector<8x1xf32>
    %93 = vector.broadcast %92 : vector<8x1xf32> to vector<8x8xf32>
    %94 = arith.divf %90, %93 : vector<8x8xf32>
    %95 = vector.extract_strided_slice %58 {offsets = [0, 8], sizes = [8, 8], strides = [1, 1]} : vector<8x32xf32> to vector<8x8xf32>
    %cst_39 = arith.constant dense<0.000000e+00> : vector<8x8xf32>
    %96 = tpu.matmul %94, %95, %cst_39 {dimension_numbers = #tpu.dot_dimension_numbers<[1], [0], [0], [1], [0, 0, 1, 1], [], []>} : vector<8x8xf32>, vector<8x8xf32>, vector<8x8xf32> -> vector<8x8xf32>
    %97 = vector.extract_strided_slice %56 {offsets = [0, 16], sizes = [8, 8], strides = [1, 1]} : vector<8x32xf32> to vector<8x8xf32>
    %98 = vector.extract_strided_slice %59 {offsets = [16, 0], sizes = [8, 8], strides = [1, 1]} : vector<32x8xf32> to vector<8x8xf32>
    %cst_40 = arith.constant dense<0.000000e+00> : vector<8x8xf32>
    %99 = tpu.matmul %97, %98, %cst_40 {dimension_numbers = #tpu.dot_dimension_numbers<[1], [0], [0], [1], [0, 0, 1, 1], [], []>} : vector<8x8xf32>, vector<8x8xf32>, vector<8x8xf32> -> vector<8x8xf32>
    %cst_41 = arith.constant 0.353553385 : f32
    %100 = vector.broadcast %cst_41 : f32 to vector<8x8xf32>
    %101 = arith.mulf %99, %100 : vector<8x8xf32>
    %102 = vector.broadcast %60 : vector<1x8xf32> to vector<8x8xf32>
    %103 = arith.addf %101, %102 : vector<8x8xf32>
    %cst_42 = arith.constant dense<0xFF800000> : vector<8xf32>
    %104 = vector.multi_reduction <maximumf>, %103, %cst_42 [1] : vector<8x8xf32> to vector<8xf32>
    %105 = vector.shape_cast %104 : vector<8xf32> to vector<8x1xf32>
    %106 = vector.broadcast %105 : vector<8x1xf32> to vector<8x8xf32>
    %107 = arith.subf %103, %106 : vector<8x8xf32>
    %108 = math.exp %107 : vector<8x8xf32>
    %cst_43 = arith.constant dense<0.000000e+00> : vector<8xf32>
    %109 = vector.multi_reduction <add>, %108, %cst_43 [1] : vector<8x8xf32> to vector<8xf32>
    %110 = vector.shape_cast %109 : vector<8xf32> to vector<8x1xf32>
    %111 = vector.broadcast %110 : vector<8x1xf32> to vector<8x8xf32>
    %112 = arith.divf %108, %111 : vector<8x8xf32>
    %113 = vector.extract_strided_slice %58 {offsets = [0, 16], sizes = [8, 8], strides = [1, 1]} : vector<8x32xf32> to vector<8x8xf32>
    %cst_44 = arith.constant dense<0.000000e+00> : vector<8x8xf32>
    %114 = tpu.matmul %112, %113, %cst_44 {dimension_numbers = #tpu.dot_dimension_numbers<[1], [0], [0], [1], [0, 0, 1, 1], [], []>} : vector<8x8xf32>, vector<8x8xf32>, vector<8x8xf32> -> vector<8x8xf32>
    %115 = vector.extract_strided_slice %56 {offsets = [0, 24], sizes = [8, 8], strides = [1, 1]} : vector<8x32xf32> to vector<8x8xf32>
    %116 = vector.extract_strided_slice %59 {offsets = [24, 0], sizes = [8, 8], strides = [1, 1]} : vector<32x8xf32> to vector<8x8xf32>
    %cst_45 = arith.constant dense<0.000000e+00> : vector<8x8xf32>
    %117 = tpu.matmul %115, %116, %cst_45 {dimension_numbers = #tpu.dot_dimension_numbers<[1], [0], [0], [1], [0, 0, 1, 1], [], []>} : vector<8x8xf32>, vector<8x8xf32>, vector<8x8xf32> -> vector<8x8xf32>
    %cst_46 = arith.constant 0.353553385 : f32
    %118 = vector.broadcast %cst_46 : f32 to vector<8x8xf32>
    %119 = arith.mulf %117, %118 : vector<8x8xf32>
    %120 = vector.broadcast %60 : vector<1x8xf32> to vector<8x8xf32>
    %121 = arith.addf %119, %120 : vector<8x8xf32>
    %cst_47 = arith.constant dense<0xFF800000> : vector<8xf32>
    %122 = vector.multi_reduction <maximumf>, %121, %cst_47 [1] : vector<8x8xf32> to vector<8xf32>
    %123 = vector.shape_cast %122 : vector<8xf32> to vector<8x1xf32>
    %124 = vector.broadcast %123 : vector<8x1xf32> to vector<8x8xf32>
    %125 = arith.subf %121, %124 : vector<8x8xf32>
    %126 = math.exp %125 : vector<8x8xf32>
    %cst_48 = arith.constant dense<0.000000e+00> : vector<8xf32>
    %127 = vector.multi_reduction <add>, %126, %cst_48 [1] : vector<8x8xf32> to vector<8xf32>
    %128 = vector.shape_cast %127 : vector<8xf32> to vector<8x1xf32>
    %129 = vector.broadcast %128 : vector<8x1xf32> to vector<8x8xf32>
    %130 = arith.divf %126, %129 : vector<8x8xf32>
    %131 = vector.extract_strided_slice %58 {offsets = [0, 24], sizes = [8, 8], strides = [1, 1]} : vector<8x32xf32> to vector<8x8xf32>
    %cst_49 = arith.constant dense<0.000000e+00> : vector<8x8xf32>
    %132 = tpu.matmul %130, %131, %cst_49 {dimension_numbers = #tpu.dot_dimension_numbers<[1], [0], [0], [1], [0, 0, 1, 1], [], []>} : vector<8x8xf32>, vector<8x8xf32>, vector<8x8xf32> -> vector<8x8xf32>
    %133 = tpu.concatenate %78, %96, %114, %132 in 1 : vector<8x8xf32>, vector<8x8xf32>, vector<8x8xf32>, vector<8x8xf32> -> vector<8x32xf32>
    %134 = vector.extract_strided_slice %55 {offsets = [8, 0], sizes = [8, 32], strides = [1, 1]} : vector<16x96xf32> to vector<8x32xf32>
    %135 = vector.extract_strided_slice %55 {offsets = [8, 32], sizes = [8, 32], strides = [1, 1]} : vector<16x96xf32> to vector<8x32xf32>
    %136 = vector.extract_strided_slice %55 {offsets = [8, 64], sizes = [8, 32], strides = [1, 1]} : vector<16x96xf32> to vector<8x32xf32>
    %137 = tpu.transpose %135, [1, 0] : vector<8x32xf32> -> vector<32x8xf32>
    %138 = vector.extract_strided_slice %48 {offsets = [1, 0], sizes = [1, 8], strides = [1, 1]} : vector<2x8xf32> to vector<1x8xf32>
    %139 = vector.extract_strided_slice %134 {offsets = [0, 0], sizes = [8, 8], strides = [1, 1]} : vector<8x32xf32> to vector<8x8xf32>
    %140 = vector.extract_strided_slice %137 {offsets = [0, 0], sizes = [8, 8], strides = [1, 1]} : vector<32x8xf32> to vector<8x8xf32>
    %cst_50 = arith.constant dense<0.000000e+00> : vector<8x8xf32>
    %141 = tpu.matmul %139, %140, %cst_50 {dimension_numbers = #tpu.dot_dimension_numbers<[1], [0], [0], [1], [0, 0, 1, 1], [], []>} : vector<8x8xf32>, vector<8x8xf32>, vector<8x8xf32> -> vector<8x8xf32>
    %cst_51 = arith.constant 0.353553385 : f32
    %142 = vector.broadcast %cst_51 : f32 to vector<8x8xf32>
    %143 = arith.mulf %141, %142 : vector<8x8xf32>
    %144 = vector.broadcast %138 : vector<1x8xf32> to vector<8x8xf32>
    %145 = arith.addf %143, %144 : vector<8x8xf32>
    %cst_52 = arith.constant dense<0xFF800000> : vector<8xf32>
    %146 = vector.multi_reduction <maximumf>, %145, %cst_52 [1] : vector<8x8xf32> to vector<8xf32>
    %147 = vector.shape_cast %146 : vector<8xf32> to vector<8x1xf32>
    %148 = vector.broadcast %147 : vector<8x1xf32> to vector<8x8xf32>
    %149 = arith.subf %145, %148 : vector<8x8xf32>
    %150 = math.exp %149 : vector<8x8xf32>
    %cst_53 = arith.constant dense<0.000000e+00> : vector<8xf32>
    %151 = vector.multi_reduction <add>, %150, %cst_53 [1] : vector<8x8xf32> to vector<8xf32>
    %152 = vector.shape_cast %151 : vector<8xf32> to vector<8x1xf32>
    %153 = vector.broadcast %152 : vector<8x1xf32> to vector<8x8xf32>
    %154 = arith.divf %150, %153 : vector<8x8xf32>
    %155 = vector.extract_strided_slice %136 {offsets = [0, 0], sizes = [8, 8], strides = [1, 1]} : vector<8x32xf32> to vector<8x8xf32>
    %cst_54 = arith.constant dense<0.000000e+00> : vector<8x8xf32>
    %156 = tpu.matmul %154, %155, %cst_54 {dimension_numbers = #tpu.dot_dimension_numbers<[1], [0], [0], [1], [0, 0, 1, 1], [], []>} : vector<8x8xf32>, vector<8x8xf32>, vector<8x8xf32> -> vector<8x8xf32>
    %157 = vector.extract_strided_slice %134 {offsets = [0, 8], sizes = [8, 8], strides = [1, 1]} : vector<8x32xf32> to vector<8x8xf32>
    %158 = vector.extract_strided_slice %137 {offsets = [8, 0], sizes = [8, 8], strides = [1, 1]} : vector<32x8xf32> to vector<8x8xf32>
    %cst_55 = arith.constant dense<0.000000e+00> : vector<8x8xf32>
    %159 = tpu.matmul %157, %158, %cst_55 {dimension_numbers = #tpu.dot_dimension_numbers<[1], [0], [0], [1], [0, 0, 1, 1], [], []>} : vector<8x8xf32>, vector<8x8xf32>, vector<8x8xf32> -> vector<8x8xf32>
    %cst_56 = arith.constant 0.353553385 : f32
    %160 = vector.broadcast %cst_56 : f32 to vector<8x8xf32>
    %161 = arith.mulf %159, %160 : vector<8x8xf32>
    %162 = vector.broadcast %138 : vector<1x8xf32> to vector<8x8xf32>
    %163 = arith.addf %161, %162 : vector<8x8xf32>
    %cst_57 = arith.constant dense<0xFF800000> : vector<8xf32>
    %164 = vector.multi_reduction <maximumf>, %163, %cst_57 [1] : vector<8x8xf32> to vector<8xf32>
    %165 = vector.shape_cast %164 : vector<8xf32> to vector<8x1xf32>
    %166 = vector.broadcast %165 : vector<8x1xf32> to vector<8x8xf32>
    %167 = arith.subf %163, %166 : vector<8x8xf32>
    %168 = math.exp %167 : vector<8x8xf32>
    %cst_58 = arith.constant dense<0.000000e+00> : vector<8xf32>
    %169 = vector.multi_reduction <add>, %168, %cst_58 [1] : vector<8x8xf32> to vector<8xf32>
    %170 = vector.shape_cast %169 : vector<8xf32> to vector<8x1xf32>
    %171 = vector.broadcast %170 : vector<8x1xf32> to vector<8x8xf32>
    %172 = arith.divf %168, %171 : vector<8x8xf32>
    %173 = vector.extract_strided_slice %136 {offsets = [0, 8], sizes = [8, 8], strides = [1, 1]} : vector<8x32xf32> to vector<8x8xf32>
    %cst_59 = arith.constant dense<0.000000e+00> : vector<8x8xf32>
    %174 = tpu.matmul %172, %173, %cst_59 {dimension_numbers = #tpu.dot_dimension_numbers<[1], [0], [0], [1], [0, 0, 1, 1], [], []>} : vector<8x8xf32>, vector<8x8xf32>, vector<8x8xf32> -> vector<8x8xf32>
    %175 = vector.extract_strided_slice %134 {offsets = [0, 16], sizes = [8, 8], strides = [1, 1]} : vector<8x32xf32> to vector<8x8xf32>
    %176 = vector.extract_strided_slice %137 {offsets = [16, 0], sizes = [8, 8], strides = [1, 1]} : vector<32x8xf32> to vector<8x8xf32>
    %cst_60 = arith.constant dense<0.000000e+00> : vector<8x8xf32>
    %177 = tpu.matmul %175, %176, %cst_60 {dimension_numbers = #tpu.dot_dimension_numbers<[1], [0], [0], [1], [0, 0, 1, 1], [], []>} : vector<8x8xf32>, vector<8x8xf32>, vector<8x8xf32> -> vector<8x8xf32>
    %cst_61 = arith.constant 0.353553385 : f32
    %178 = vector.broadcast %cst_61 : f32 to vector<8x8xf32>
    %179 = arith.mulf %177, %178 : vector<8x8xf32>
    %180 = vector.broadcast %138 : vector<1x8xf32> to vector<8x8xf32>
    %181 = arith.addf %179, %180 : vector<8x8xf32>
    %cst_62 = arith.constant dense<0xFF800000> : vector<8xf32>
    %182 = vector.multi_reduction <maximumf>, %181, %cst_62 [1] : vector<8x8xf32> to vector<8xf32>
    %183 = vector.shape_cast %182 : vector<8xf32> to vector<8x1xf32>
    %184 = vector.broadcast %183 : vector<8x1xf32> to vector<8x8xf32>
    %185 = arith.subf %181, %184 : vector<8x8xf32>
    %186 = math.exp %185 : vector<8x8xf32>
    %cst_63 = arith.constant dense<0.000000e+00> : vector<8xf32>
    %187 = vector.multi_reduction <add>, %186, %cst_63 [1] : vector<8x8xf32> to vector<8xf32>
    %188 = vector.shape_cast %187 : vector<8xf32> to vector<8x1xf32>
    %189 = vector.broadcast %188 : vector<8x1xf32> to vector<8x8xf32>
    %190 = arith.divf %186, %189 : vector<8x8xf32>
    %191 = vector.extract_strided_slice %136 {offsets = [0, 16], sizes = [8, 8], strides = [1, 1]} : vector<8x32xf32> to vector<8x8xf32>
    %cst_64 = arith.constant dense<0.000000e+00> : vector<8x8xf32>
    %192 = tpu.matmul %190, %191, %cst_64 {dimension_numbers = #tpu.dot_dimension_numbers<[1], [0], [0], [1], [0, 0, 1, 1], [], []>} : vector<8x8xf32>, vector<8x8xf32>, vector<8x8xf32> -> vector<8x8xf32>
    %193 = vector.extract_strided_slice %134 {offsets = [0, 24], sizes = [8, 8], strides = [1, 1]} : vector<8x32xf32> to vector<8x8xf32>
    %194 = vector.extract_strided_slice %137 {offsets = [24, 0], sizes = [8, 8], strides = [1, 1]} : vector<32x8xf32> to vector<8x8xf32>
    %cst_65 = arith.constant dense<0.000000e+00> : vector<8x8xf32>
    %195 = tpu.matmul %193, %194, %cst_65 {dimension_numbers = #tpu.dot_dimension_numbers<[1], [0], [0], [1], [0, 0, 1, 1], [], []>} : vector<8x8xf32>, vector<8x8xf32>, vector<8x8xf32> -> vector<8x8xf32>
    %cst_66 = arith.constant 0.353553385 : f32
    %196 = vector.broadcast %cst_66 : f32 to vector<8x8xf32>
    %197 = arith.mulf %195, %196 : vector<8x8xf32>
    %198 = vector.broadcast %138 : vector<1x8xf32> to vector<8x8xf32>
    %199 = arith.addf %197, %198 : vector<8x8xf32>
    %cst_67 = arith.constant dense<0xFF800000> : vector<8xf32>
    %200 = vector.multi_reduction <maximumf>, %199, %cst_67 [1] : vector<8x8xf32> to vector<8xf32>
    %201 = vector.shape_cast %200 : vector<8xf32> to vector<8x1xf32>
    %202 = vector.broadcast %201 : vector<8x1xf32> to vector<8x8xf32>
    %203 = arith.subf %199, %202 : vector<8x8xf32>
    %204 = math.exp %203 : vector<8x8xf32>
    %cst_68 = arith.constant dense<0.000000e+00> : vector<8xf32>
    %205 = vector.multi_reduction <add>, %204, %cst_68 [1] : vector<8x8xf32> to vector<8xf32>
    %206 = vector.shape_cast %205 : vector<8xf32> to vector<8x1xf32>
    %207 = vector.broadcast %206 : vector<8x1xf32> to vector<8x8xf32>
    %208 = arith.divf %204, %207 : vector<8x8xf32>
    %209 = vector.extract_strided_slice %136 {offsets = [0, 24], sizes = [8, 8], strides = [1, 1]} : vector<8x32xf32> to vector<8x8xf32>
    %cst_69 = arith.constant dense<0.000000e+00> : vector<8x8xf32>
    %210 = tpu.matmul %208, %209, %cst_69 {dimension_numbers = #tpu.dot_dimension_numbers<[1], [0], [0], [1], [0, 0, 1, 1], [], []>} : vector<8x8xf32>, vector<8x8xf32>, vector<8x8xf32> -> vector<8x8xf32>
    %211 = tpu.concatenate %156, %174, %192, %210 in 1 : vector<8x8xf32>, vector<8x8xf32>, vector<8x8xf32>, vector<8x8xf32> -> vector<8x32xf32>
    %212 = tpu.concatenate %133, %211 in 0 : vector<8x32xf32>, vector<8x32xf32> -> vector<16x32xf32>
    %c0_70 = arith.constant 0 : index
    %c0_71 = arith.constant 0 : index
    %c0_72 = arith.constant 0 : index
    %213 = vector.load %arg10[%c0_70, %c0_71, %c0_72] : memref<2x32x32xf32, #tpu.memory_space<vmem>>, vector<1x32x32xf32>
    %214 = vector.shape_cast %213 : vector<1x32x32xf32> to vector<32x32xf32>
    %cst_73 = arith.constant dense<0.000000e+00> : vector<16x32xf32>
    %215 = tpu.matmul %212, %214, %cst_73 {dimension_numbers = #tpu.dot_dimension_numbers<[1], [0], [0], [1], [0, 0, 1, 1], [], []>} : vector<16x32xf32>, vector<32x32xf32>, vector<16x32xf32> -> vector<16x32xf32>
    %c0_74 = arith.constant 0 : index
    %c0_75 = arith.constant 0 : index
    %c0_76 = arith.constant 0 : index
    %216 = vector.load %arg11[%c0_74, %c0_75, %c0_76] : memref<2x1x32xf32, #tpu.memory_space<vmem>>, vector<1x1x32xf32>
    %217 = vector.shape_cast %216 : vector<1x1x32xf32> to vector<1x32xf32>
    %218 = vector.broadcast %217 : vector<1x32xf32> to vector<16x32xf32>
    %219 = arith.addf %215, %218 : vector<16x32xf32>
    %220 = arith.addf %219, %43 : vector<16x32xf32>
    %c0_77 = arith.constant 0 : index
    %c0_78 = arith.constant 0 : index
    %c0_79 = arith.constant 0 : index
    %221 = vector.load %arg12[%c0_77, %c0_78, %c0_79] : memref<2x1x32xf32, #tpu.memory_space<vmem>>, vector<1x1x32xf32>
    %222 = vector.shape_cast %221 : vector<1x1x32xf32> to vector<1x32xf32>
    %c0_80 = arith.constant 0 : index
    %c0_81 = arith.constant 0 : index
    %c0_82 = arith.constant 0 : index
    %223 = vector.load %arg13[%c0_80, %c0_81, %c0_82] : memref<2x1x32xf32, #tpu.memory_space<vmem>>, vector<1x1x32xf32>
    %224 = vector.shape_cast %223 : vector<1x1x32xf32> to vector<1x32xf32>
    %cst_83 = arith.constant dense<0.000000e+00> : vector<16xf32>
    %225 = vector.multi_reduction <add>, %220, %cst_83 [1] : vector<16x32xf32> to vector<16xf32>
    %226 = vector.shape_cast %225 : vector<16xf32> to vector<16x1xf32>
    %cst_84 = arith.constant 3.200000e+01 : f32
    %227 = vector.broadcast %cst_84 : f32 to vector<16x1xf32>
    %228 = arith.divf %226, %227 : vector<16x1xf32>
    %229 = vector.broadcast %228 : vector<16x1xf32> to vector<16x32xf32>
    %230 = arith.subf %220, %229 : vector<16x32xf32>
    %231 = arith.mulf %230, %230 : vector<16x32xf32>
    %cst_85 = arith.constant dense<0.000000e+00> : vector<16xf32>
    %232 = vector.multi_reduction <add>, %231, %cst_85 [1] : vector<16x32xf32> to vector<16xf32>
    %233 = vector.shape_cast %232 : vector<16xf32> to vector<16x1xf32>
    %cst_86 = arith.constant 3.200000e+01 : f32
    %234 = vector.broadcast %cst_86 : f32 to vector<16x1xf32>
    %235 = arith.divf %233, %234 : vector<16x1xf32>
    %236 = vector.broadcast %228 : vector<16x1xf32> to vector<16x32xf32>
    %237 = arith.subf %220, %236 : vector<16x32xf32>
    %cst_87 = arith.constant 9.99999996E-13 : f32
    %238 = vector.broadcast %cst_87 : f32 to vector<16x1xf32>
    %239 = arith.addf %235, %238 : vector<16x1xf32>
    %240 = math.rsqrt %239 : vector<16x1xf32>
    %241 = vector.broadcast %240 : vector<16x1xf32> to vector<16x32xf32>
    %242 = arith.mulf %237, %241 : vector<16x32xf32>
    %243 = vector.broadcast %222 : vector<1x32xf32> to vector<16x32xf32>
    %244 = arith.mulf %242, %243 : vector<16x32xf32>
    %245 = vector.broadcast %224 : vector<1x32xf32> to vector<16x32xf32>
    %246 = arith.addf %244, %245 : vector<16x32xf32>
    %c0_88 = arith.constant 0 : index
    %c0_89 = arith.constant 0 : index
    %c0_90 = arith.constant 0 : index
    %247 = vector.load %arg14[%c0_88, %c0_89, %c0_90] : memref<2x32x64xf32, #tpu.memory_space<vmem>>, vector<1x32x64xf32>
    %248 = vector.shape_cast %247 : vector<1x32x64xf32> to vector<32x64xf32>
    %cst_91 = arith.constant dense<0.000000e+00> : vector<16x64xf32>
    %249 = tpu.matmul %246, %248, %cst_91 {dimension_numbers = #tpu.dot_dimension_numbers<[1], [0], [0], [1], [0, 0, 1, 1], [], []>} : vector<16x32xf32>, vector<32x64xf32>, vector<16x64xf32> -> vector<16x64xf32>
    %c0_92 = arith.constant 0 : index
    %c0_93 = arith.constant 0 : index
    %c0_94 = arith.constant 0 : index
    %250 = vector.load %arg15[%c0_92, %c0_93, %c0_94] : memref<2x1x64xf32, #tpu.memory_space<vmem>>, vector<1x1x64xf32>
    %251 = vector.shape_cast %250 : vector<1x1x64xf32> to vector<1x64xf32>
    %252 = vector.broadcast %251 : vector<1x64xf32> to vector<16x64xf32>
    %253 = arith.addf %249, %252 : vector<16x64xf32>
    %254 = arith.mulf %253, %253 : vector<16x64xf32>
    %255 = arith.mulf %253, %254 : vector<16x64xf32>
    %cst_95 = arith.constant 4.471500e-02 : f32
    %256 = vector.broadcast %cst_95 : f32 to vector<16x64xf32>
    %257 = arith.mulf %256, %255 : vector<16x64xf32>
    %258 = arith.addf %253, %257 : vector<16x64xf32>
    %cst_96 = arith.constant 0.797884583 : f32
    %259 = vector.broadcast %cst_96 : f32 to vector<16x64xf32>
    %260 = arith.mulf %259, %258 : vector<16x64xf32>
    %261 = math.tanh %260 : vector<16x64xf32>
    %cst_97 = arith.constant 1.000000e+00 : f32
    %262 = vector.broadcast %cst_97 : f32 to vector<16x64xf32>
    %263 = arith.addf %262, %261 : vector<16x64xf32>
    %cst_98 = arith.constant 5.000000e-01 : f32
    %264 = vector.broadcast %cst_98 : f32 to vector<16x64xf32>
    %265 = arith.mulf %264, %263 : vector<16x64xf32>
    %266 = arith.mulf %253, %265 : vector<16x64xf32>
    %c0_99 = arith.constant 0 : index
    %c0_100 = arith.constant 0 : index
    %c0_101 = arith.constant 0 : index
    %267 = vector.load %arg16[%c0_99, %c0_100, %c0_101] : memref<2x64x32xf32, #tpu.memory_space<vmem>>, vector<1x64x32xf32>
    %268 = vector.shape_cast %267 : vector<1x64x32xf32> to vector<64x32xf32>
    %cst_102 = arith.constant dense<0.000000e+00> : vector<16x32xf32>
    %269 = tpu.matmul %266, %268, %cst_102 {dimension_numbers = #tpu.dot_dimension_numbers<[1], [0], [0], [1], [0, 0, 1, 1], [], []>} : vector<16x64xf32>, vector<64x32xf32>, vector<16x32xf32> -> vector<16x32xf32>
    %c0_103 = arith.constant 0 : index
    %c0_104 = arith.constant 0 : index
    %c0_105 = arith.constant 0 : index
    %270 = vector.load %arg17[%c0_103, %c0_104, %c0_105] : memref<2x1x32xf32, #tpu.memory_space<vmem>>, vector<1x1x32xf32>
    %271 = vector.shape_cast %270 : vector<1x1x32xf32> to vector<1x32xf32>
    %272 = vector.broadcast %271 : vector<1x32xf32> to vector<16x32xf32>
    %273 = arith.addf %269, %272 : vector<16x32xf32>
    %274 = arith.addf %273, %246 : vector<16x32xf32>
    %c0_106 = arith.constant 0 : index
    %c0_107 = arith.constant 0 : index
    %c0_108 = arith.constant 0 : index
    %275 = vector.load %arg18[%c0_106, %c0_107, %c0_108] : memref<2x1x32xf32, #tpu.memory_space<vmem>>, vector<1x1x32xf32>
    %276 = vector.shape_cast %275 : vector<1x1x32xf32> to vector<1x32xf32>
    %c0_109 = arith.constant 0 : index
    %c0_110 = arith.constant 0 : index
    %c0_111 = arith.constant 0 : index
    %277 = vector.load %arg19[%c0_109, %c0_110, %c0_111] : memref<2x1x32xf32, #tpu.memory_space<vmem>>, vector<1x1x32xf32>
    %278 = vector.shape_cast %277 : vector<1x1x32xf32> to vector<1x32xf32>
    %cst_112 = arith.constant dense<0.000000e+00> : vector<16xf32>
    %279 = vector.multi_reduction <add>, %274, %cst_112 [1] : vector<16x32xf32> to vector<16xf32>
    %280 = vector.shape_cast %279 : vector<16xf32> to vector<16x1xf32>
    %cst_113 = arith.constant 3.200000e+01 : f32
    %281 = vector.broadcast %cst_113 : f32 to vector<16x1xf32>
    %282 = arith.divf %280, %281 : vector<16x1xf32>
    %283 = vector.broadcast %282 : vector<16x1xf32> to vector<16x32xf32>
    %284 = arith.subf %274, %283 : vector<16x32xf32>
    %285 = arith.mulf %284, %284 : vector<16x32xf32>
    %cst_114 = arith.constant dense<0.000000e+00> : vector<16xf32>
    %286 = vector.multi_reduction <add>, %285, %cst_114 [1] : vector<16x32xf32> to vector<16xf32>
    %287 = vector.shape_cast %286 : vector<16xf32> to vector<16x1xf32>
    %cst_115 = arith.constant 3.200000e+01 : f32
    %288 = vector.broadcast %cst_115 : f32 to vector<16x1xf32>
    %289 = arith.divf %287, %288 : vector<16x1xf32>
    %290 = vector.broadcast %282 : vector<16x1xf32> to vector<16x32xf32>
    %291 = arith.subf %274, %290 : vector<16x32xf32>
    %cst_116 = arith.constant 9.99999996E-13 : f32
    %292 = vector.broadcast %cst_116 : f32 to vector<16x1xf32>
    %293 = arith.addf %289, %292 : vector<16x1xf32>
    %294 = math.rsqrt %293 : vector<16x1xf32>
    %295 = vector.broadcast %294 : vector<16x1xf32> to vector<16x32xf32>
    %296 = arith.mulf %291, %295 : vector<16x32xf32>
    %297 = vector.broadcast %276 : vector<1x32xf32> to vector<16x32xf32>
    %298 = arith.mulf %296, %297 : vector<16x32xf32>
    %299 = vector.broadcast %278 : vector<1x32xf32> to vector<16x32xf32>
    %300 = arith.addf %298, %299 : vector<16x32xf32>
    %c1 = arith.constant 1 : index
    %c0_117 = arith.constant 0 : index
    %c0_118 = arith.constant 0 : index
    %301 = vector.load %arg8[%c1, %c0_117, %c0_118] : memref<2x32x96xf32, #tpu.memory_space<vmem>>, vector<1x32x96xf32>
    %302 = vector.shape_cast %301 : vector<1x32x96xf32> to vector<32x96xf32>
    %cst_119 = arith.constant dense<0.000000e+00> : vector<16x96xf32>
    %303 = tpu.matmul %300, %302, %cst_119 {dimension_numbers = #tpu.dot_dimension_numbers<[1], [0], [0], [1], [0, 0, 1, 1], [], []>} : vector<16x32xf32>, vector<32x96xf32>, vector<16x96xf32> -> vector<16x96xf32>
    %c1_120 = arith.constant 1 : index
    %c0_121 = arith.constant 0 : index
    %c0_122 = arith.constant 0 : index
    %304 = vector.load %arg9[%c1_120, %c0_121, %c0_122] : memref<2x1x96xf32, #tpu.memory_space<vmem>>, vector<1x1x96xf32>
    %305 = vector.shape_cast %304 : vector<1x1x96xf32> to vector<1x96xf32>
    %306 = vector.broadcast %305 : vector<1x96xf32> to vector<16x96xf32>
    %307 = arith.addf %303, %306 : vector<16x96xf32>
    %308 = vector.extract_strided_slice %307 {offsets = [0, 0], sizes = [8, 32], strides = [1, 1]} : vector<16x96xf32> to vector<8x32xf32>
    %309 = vector.extract_strided_slice %307 {offsets = [0, 32], sizes = [8, 32], strides = [1, 1]} : vector<16x96xf32> to vector<8x32xf32>
    %310 = vector.extract_strided_slice %307 {offsets = [0, 64], sizes = [8, 32], strides = [1, 1]} : vector<16x96xf32> to vector<8x32xf32>
    %311 = tpu.transpose %309, [1, 0] : vector<8x32xf32> -> vector<32x8xf32>
    %312 = vector.extract_strided_slice %48 {offsets = [0, 0], sizes = [1, 8], strides = [1, 1]} : vector<2x8xf32> to vector<1x8xf32>
    %313 = vector.extract_strided_slice %308 {offsets = [0, 0], sizes = [8, 8], strides = [1, 1]} : vector<8x32xf32> to vector<8x8xf32>
    %314 = vector.extract_strided_slice %311 {offsets = [0, 0], sizes = [8, 8], strides = [1, 1]} : vector<32x8xf32> to vector<8x8xf32>
    %cst_123 = arith.constant dense<0.000000e+00> : vector<8x8xf32>
    %315 = tpu.matmul %313, %314, %cst_123 {dimension_numbers = #tpu.dot_dimension_numbers<[1], [0], [0], [1], [0, 0, 1, 1], [], []>} : vector<8x8xf32>, vector<8x8xf32>, vector<8x8xf32> -> vector<8x8xf32>
    %cst_124 = arith.constant 0.353553385 : f32
    %316 = vector.broadcast %cst_124 : f32 to vector<8x8xf32>
    %317 = arith.mulf %315, %316 : vector<8x8xf32>
    %318 = vector.broadcast %312 : vector<1x8xf32> to vector<8x8xf32>
    %319 = arith.addf %317, %318 : vector<8x8xf32>
    %cst_125 = arith.constant dense<0xFF800000> : vector<8xf32>
    %320 = vector.multi_reduction <maximumf>, %319, %cst_125 [1] : vector<8x8xf32> to vector<8xf32>
    %321 = vector.shape_cast %320 : vector<8xf32> to vector<8x1xf32>
    %322 = vector.broadcast %321 : vector<8x1xf32> to vector<8x8xf32>
    %323 = arith.subf %319, %322 : vector<8x8xf32>
    %324 = math.exp %323 : vector<8x8xf32>
    %cst_126 = arith.constant dense<0.000000e+00> : vector<8xf32>
    %325 = vector.multi_reduction <add>, %324, %cst_126 [1] : vector<8x8xf32> to vector<8xf32>
    %326 = vector.shape_cast %325 : vector<8xf32> to vector<8x1xf32>
    %327 = vector.broadcast %326 : vector<8x1xf32> to vector<8x8xf32>
    %328 = arith.divf %324, %327 : vector<8x8xf32>
    %329 = vector.extract_strided_slice %310 {offsets = [0, 0], sizes = [8, 8], strides = [1, 1]} : vector<8x32xf32> to vector<8x8xf32>
    %cst_127 = arith.constant dense<0.000000e+00> : vector<8x8xf32>
    %330 = tpu.matmul %328, %329, %cst_127 {dimension_numbers = #tpu.dot_dimension_numbers<[1], [0], [0], [1], [0, 0, 1, 1], [], []>} : vector<8x8xf32>, vector<8x8xf32>, vector<8x8xf32> -> vector<8x8xf32>
    %331 = vector.extract_strided_slice %308 {offsets = [0, 8], sizes = [8, 8], strides = [1, 1]} : vector<8x32xf32> to vector<8x8xf32>
    %332 = vector.extract_strided_slice %311 {offsets = [8, 0], sizes = [8, 8], strides = [1, 1]} : vector<32x8xf32> to vector<8x8xf32>
    %cst_128 = arith.constant dense<0.000000e+00> : vector<8x8xf32>
    %333 = tpu.matmul %331, %332, %cst_128 {dimension_numbers = #tpu.dot_dimension_numbers<[1], [0], [0], [1], [0, 0, 1, 1], [], []>} : vector<8x8xf32>, vector<8x8xf32>, vector<8x8xf32> -> vector<8x8xf32>
    %cst_129 = arith.constant 0.353553385 : f32
    %334 = vector.broadcast %cst_129 : f32 to vector<8x8xf32>
    %335 = arith.mulf %333, %334 : vector<8x8xf32>
    %336 = vector.broadcast %312 : vector<1x8xf32> to vector<8x8xf32>
    %337 = arith.addf %335, %336 : vector<8x8xf32>
    %cst_130 = arith.constant dense<0xFF800000> : vector<8xf32>
    %338 = vector.multi_reduction <maximumf>, %337, %cst_130 [1] : vector<8x8xf32> to vector<8xf32>
    %339 = vector.shape_cast %338 : vector<8xf32> to vector<8x1xf32>
    %340 = vector.broadcast %339 : vector<8x1xf32> to vector<8x8xf32>
    %341 = arith.subf %337, %340 : vector<8x8xf32>
    %342 = math.exp %341 : vector<8x8xf32>
    %cst_131 = arith.constant dense<0.000000e+00> : vector<8xf32>
    %343 = vector.multi_reduction <add>, %342, %cst_131 [1] : vector<8x8xf32> to vector<8xf32>
    %344 = vector.shape_cast %343 : vector<8xf32> to vector<8x1xf32>
    %345 = vector.broadcast %344 : vector<8x1xf32> to vector<8x8xf32>
    %346 = arith.divf %342, %345 : vector<8x8xf32>
    %347 = vector.extract_strided_slice %310 {offsets = [0, 8], sizes = [8, 8], strides = [1, 1]} : vector<8x32xf32> to vector<8x8xf32>
    %cst_132 = arith.constant dense<0.000000e+00> : vector<8x8xf32>
    %348 = tpu.matmul %346, %347, %cst_132 {dimension_numbers = #tpu.dot_dimension_numbers<[1], [0], [0], [1], [0, 0, 1, 1], [], []>} : vector<8x8xf32>, vector<8x8xf32>, vector<8x8xf32> -> vector<8x8xf32>
    %349 = vector.extract_strided_slice %308 {offsets = [0, 16], sizes = [8, 8], strides = [1, 1]} : vector<8x32xf32> to vector<8x8xf32>
    %350 = vector.extract_strided_slice %311 {offsets = [16, 0], sizes = [8, 8], strides = [1, 1]} : vector<32x8xf32> to vector<8x8xf32>
    %cst_133 = arith.constant dense<0.000000e+00> : vector<8x8xf32>
    %351 = tpu.matmul %349, %350, %cst_133 {dimension_numbers = #tpu.dot_dimension_numbers<[1], [0], [0], [1], [0, 0, 1, 1], [], []>} : vector<8x8xf32>, vector<8x8xf32>, vector<8x8xf32> -> vector<8x8xf32>
    %cst_134 = arith.constant 0.353553385 : f32
    %352 = vector.broadcast %cst_134 : f32 to vector<8x8xf32>
    %353 = arith.mulf %351, %352 : vector<8x8xf32>
    %354 = vector.broadcast %312 : vector<1x8xf32> to vector<8x8xf32>
    %355 = arith.addf %353, %354 : vector<8x8xf32>
    %cst_135 = arith.constant dense<0xFF800000> : vector<8xf32>
    %356 = vector.multi_reduction <maximumf>, %355, %cst_135 [1] : vector<8x8xf32> to vector<8xf32>
    %357 = vector.shape_cast %356 : vector<8xf32> to vector<8x1xf32>
    %358 = vector.broadcast %357 : vector<8x1xf32> to vector<8x8xf32>
    %359 = arith.subf %355, %358 : vector<8x8xf32>
    %360 = math.exp %359 : vector<8x8xf32>
    %cst_136 = arith.constant dense<0.000000e+00> : vector<8xf32>
    %361 = vector.multi_reduction <add>, %360, %cst_136 [1] : vector<8x8xf32> to vector<8xf32>
    %362 = vector.shape_cast %361 : vector<8xf32> to vector<8x1xf32>
    %363 = vector.broadcast %362 : vector<8x1xf32> to vector<8x8xf32>
    %364 = arith.divf %360, %363 : vector<8x8xf32>
    %365 = vector.extract_strided_slice %310 {offsets = [0, 16], sizes = [8, 8], strides = [1, 1]} : vector<8x32xf32> to vector<8x8xf32>
    %cst_137 = arith.constant dense<0.000000e+00> : vector<8x8xf32>
    %366 = tpu.matmul %364, %365, %cst_137 {dimension_numbers = #tpu.dot_dimension_numbers<[1], [0], [0], [1], [0, 0, 1, 1], [], []>} : vector<8x8xf32>, vector<8x8xf32>, vector<8x8xf32> -> vector<8x8xf32>
    %367 = vector.extract_strided_slice %308 {offsets = [0, 24], sizes = [8, 8], strides = [1, 1]} : vector<8x32xf32> to vector<8x8xf32>
    %368 = vector.extract_strided_slice %311 {offsets = [24, 0], sizes = [8, 8], strides = [1, 1]} : vector<32x8xf32> to vector<8x8xf32>
    %cst_138 = arith.constant dense<0.000000e+00> : vector<8x8xf32>
    %369 = tpu.matmul %367, %368, %cst_138 {dimension_numbers = #tpu.dot_dimension_numbers<[1], [0], [0], [1], [0, 0, 1, 1], [], []>} : vector<8x8xf32>, vector<8x8xf32>, vector<8x8xf32> -> vector<8x8xf32>
    %cst_139 = arith.constant 0.353553385 : f32
    %370 = vector.broadcast %cst_139 : f32 to vector<8x8xf32>
    %371 = arith.mulf %369, %370 : vector<8x8xf32>
    %372 = vector.broadcast %312 : vector<1x8xf32> to vector<8x8xf32>
    %373 = arith.addf %371, %372 : vector<8x8xf32>
    %cst_140 = arith.constant dense<0xFF800000> : vector<8xf32>
    %374 = vector.multi_reduction <maximumf>, %373, %cst_140 [1] : vector<8x8xf32> to vector<8xf32>
    %375 = vector.shape_cast %374 : vector<8xf32> to vector<8x1xf32>
    %376 = vector.broadcast %375 : vector<8x1xf32> to vector<8x8xf32>
    %377 = arith.subf %373, %376 : vector<8x8xf32>
    %378 = math.exp %377 : vector<8x8xf32>
    %cst_141 = arith.constant dense<0.000000e+00> : vector<8xf32>
    %379 = vector.multi_reduction <add>, %378, %cst_141 [1] : vector<8x8xf32> to vector<8xf32>
    %380 = vector.shape_cast %379 : vector<8xf32> to vector<8x1xf32>
    %381 = vector.broadcast %380 : vector<8x1xf32> to vector<8x8xf32>
    %382 = arith.divf %378, %381 : vector<8x8xf32>
    %383 = vector.extract_strided_slice %310 {offsets = [0, 24], sizes = [8, 8], strides = [1, 1]} : vector<8x32xf32> to vector<8x8xf32>
    %cst_142 = arith.constant dense<0.000000e+00> : vector<8x8xf32>
    %384 = tpu.matmul %382, %383, %cst_142 {dimension_numbers = #tpu.dot_dimension_numbers<[1], [0], [0], [1], [0, 0, 1, 1], [], []>} : vector<8x8xf32>, vector<8x8xf32>, vector<8x8xf32> -> vector<8x8xf32>
    %385 = tpu.concatenate %330, %348, %366, %384 in 1 : vector<8x8xf32>, vector<8x8xf32>, vector<8x8xf32>, vector<8x8xf32> -> vector<8x32xf32>
    %386 = vector.extract_strided_slice %307 {offsets = [8, 0], sizes = [8, 32], strides = [1, 1]} : vector<16x96xf32> to vector<8x32xf32>
    %387 = vector.extract_strided_slice %307 {offsets = [8, 32], sizes = [8, 32], strides = [1, 1]} : vector<16x96xf32> to vector<8x32xf32>
    %388 = vector.extract_strided_slice %307 {offsets = [8, 64], sizes = [8, 32], strides = [1, 1]} : vector<16x96xf32> to vector<8x32xf32>
    %389 = tpu.transpose %387, [1, 0] : vector<8x32xf32> -> vector<32x8xf32>
    %390 = vector.extract_strided_slice %48 {offsets = [1, 0], sizes = [1, 8], strides = [1, 1]} : vector<2x8xf32> to vector<1x8xf32>
    %391 = vector.extract_strided_slice %386 {offsets = [0, 0], sizes = [8, 8], strides = [1, 1]} : vector<8x32xf32> to vector<8x8xf32>
    %392 = vector.extract_strided_slice %389 {offsets = [0, 0], sizes = [8, 8], strides = [1, 1]} : vector<32x8xf32> to vector<8x8xf32>
    %cst_143 = arith.constant dense<0.000000e+00> : vector<8x8xf32>
    %393 = tpu.matmul %391, %392, %cst_143 {dimension_numbers = #tpu.dot_dimension_numbers<[1], [0], [0], [1], [0, 0, 1, 1], [], []>} : vector<8x8xf32>, vector<8x8xf32>, vector<8x8xf32> -> vector<8x8xf32>
    %cst_144 = arith.constant 0.353553385 : f32
    %394 = vector.broadcast %cst_144 : f32 to vector<8x8xf32>
    %395 = arith.mulf %393, %394 : vector<8x8xf32>
    %396 = vector.broadcast %390 : vector<1x8xf32> to vector<8x8xf32>
    %397 = arith.addf %395, %396 : vector<8x8xf32>
    %cst_145 = arith.constant dense<0xFF800000> : vector<8xf32>
    %398 = vector.multi_reduction <maximumf>, %397, %cst_145 [1] : vector<8x8xf32> to vector<8xf32>
    %399 = vector.shape_cast %398 : vector<8xf32> to vector<8x1xf32>
    %400 = vector.broadcast %399 : vector<8x1xf32> to vector<8x8xf32>
    %401 = arith.subf %397, %400 : vector<8x8xf32>
    %402 = math.exp %401 : vector<8x8xf32>
    %cst_146 = arith.constant dense<0.000000e+00> : vector<8xf32>
    %403 = vector.multi_reduction <add>, %402, %cst_146 [1] : vector<8x8xf32> to vector<8xf32>
    %404 = vector.shape_cast %403 : vector<8xf32> to vector<8x1xf32>
    %405 = vector.broadcast %404 : vector<8x1xf32> to vector<8x8xf32>
    %406 = arith.divf %402, %405 : vector<8x8xf32>
    %407 = vector.extract_strided_slice %388 {offsets = [0, 0], sizes = [8, 8], strides = [1, 1]} : vector<8x32xf32> to vector<8x8xf32>
    %cst_147 = arith.constant dense<0.000000e+00> : vector<8x8xf32>
    %408 = tpu.matmul %406, %407, %cst_147 {dimension_numbers = #tpu.dot_dimension_numbers<[1], [0], [0], [1], [0, 0, 1, 1], [], []>} : vector<8x8xf32>, vector<8x8xf32>, vector<8x8xf32> -> vector<8x8xf32>
    %409 = vector.extract_strided_slice %386 {offsets = [0, 8], sizes = [8, 8], strides = [1, 1]} : vector<8x32xf32> to vector<8x8xf32>
    %410 = vector.extract_strided_slice %389 {offsets = [8, 0], sizes = [8, 8], strides = [1, 1]} : vector<32x8xf32> to vector<8x8xf32>
    %cst_148 = arith.constant dense<0.000000e+00> : vector<8x8xf32>
    %411 = tpu.matmul %409, %410, %cst_148 {dimension_numbers = #tpu.dot_dimension_numbers<[1], [0], [0], [1], [0, 0, 1, 1], [], []>} : vector<8x8xf32>, vector<8x8xf32>, vector<8x8xf32> -> vector<8x8xf32>
    %cst_149 = arith.constant 0.353553385 : f32
    %412 = vector.broadcast %cst_149 : f32 to vector<8x8xf32>
    %413 = arith.mulf %411, %412 : vector<8x8xf32>
    %414 = vector.broadcast %390 : vector<1x8xf32> to vector<8x8xf32>
    %415 = arith.addf %413, %414 : vector<8x8xf32>
    %cst_150 = arith.constant dense<0xFF800000> : vector<8xf32>
    %416 = vector.multi_reduction <maximumf>, %415, %cst_150 [1] : vector<8x8xf32> to vector<8xf32>
    %417 = vector.shape_cast %416 : vector<8xf32> to vector<8x1xf32>
    %418 = vector.broadcast %417 : vector<8x1xf32> to vector<8x8xf32>
    %419 = arith.subf %415, %418 : vector<8x8xf32>
    %420 = math.exp %419 : vector<8x8xf32>
    %cst_151 = arith.constant dense<0.000000e+00> : vector<8xf32>
    %421 = vector.multi_reduction <add>, %420, %cst_151 [1] : vector<8x8xf32> to vector<8xf32>
    %422 = vector.shape_cast %421 : vector<8xf32> to vector<8x1xf32>
    %423 = vector.broadcast %422 : vector<8x1xf32> to vector<8x8xf32>
    %424 = arith.divf %420, %423 : vector<8x8xf32>
    %425 = vector.extract_strided_slice %388 {offsets = [0, 8], sizes = [8, 8], strides = [1, 1]} : vector<8x32xf32> to vector<8x8xf32>
    %cst_152 = arith.constant dense<0.000000e+00> : vector<8x8xf32>
    %426 = tpu.matmul %424, %425, %cst_152 {dimension_numbers = #tpu.dot_dimension_numbers<[1], [0], [0], [1], [0, 0, 1, 1], [], []>} : vector<8x8xf32>, vector<8x8xf32>, vector<8x8xf32> -> vector<8x8xf32>
    %427 = vector.extract_strided_slice %386 {offsets = [0, 16], sizes = [8, 8], strides = [1, 1]} : vector<8x32xf32> to vector<8x8xf32>
    %428 = vector.extract_strided_slice %389 {offsets = [16, 0], sizes = [8, 8], strides = [1, 1]} : vector<32x8xf32> to vector<8x8xf32>
    %cst_153 = arith.constant dense<0.000000e+00> : vector<8x8xf32>
    %429 = tpu.matmul %427, %428, %cst_153 {dimension_numbers = #tpu.dot_dimension_numbers<[1], [0], [0], [1], [0, 0, 1, 1], [], []>} : vector<8x8xf32>, vector<8x8xf32>, vector<8x8xf32> -> vector<8x8xf32>
    %cst_154 = arith.constant 0.353553385 : f32
    %430 = vector.broadcast %cst_154 : f32 to vector<8x8xf32>
    %431 = arith.mulf %429, %430 : vector<8x8xf32>
    %432 = vector.broadcast %390 : vector<1x8xf32> to vector<8x8xf32>
    %433 = arith.addf %431, %432 : vector<8x8xf32>
    %cst_155 = arith.constant dense<0xFF800000> : vector<8xf32>
    %434 = vector.multi_reduction <maximumf>, %433, %cst_155 [1] : vector<8x8xf32> to vector<8xf32>
    %435 = vector.shape_cast %434 : vector<8xf32> to vector<8x1xf32>
    %436 = vector.broadcast %435 : vector<8x1xf32> to vector<8x8xf32>
    %437 = arith.subf %433, %436 : vector<8x8xf32>
    %438 = math.exp %437 : vector<8x8xf32>
    %cst_156 = arith.constant dense<0.000000e+00> : vector<8xf32>
    %439 = vector.multi_reduction <add>, %438, %cst_156 [1] : vector<8x8xf32> to vector<8xf32>
    %440 = vector.shape_cast %439 : vector<8xf32> to vector<8x1xf32>
    %441 = vector.broadcast %440 : vector<8x1xf32> to vector<8x8xf32>
    %442 = arith.divf %438, %441 : vector<8x8xf32>
    %443 = vector.extract_strided_slice %388 {offsets = [0, 16], sizes = [8, 8], strides = [1, 1]} : vector<8x32xf32> to vector<8x8xf32>
    %cst_157 = arith.constant dense<0.000000e+00> : vector<8x8xf32>
    %444 = tpu.matmul %442, %443, %cst_157 {dimension_numbers = #tpu.dot_dimension_numbers<[1], [0], [0], [1], [0, 0, 1, 1], [], []>} : vector<8x8xf32>, vector<8x8xf32>, vector<8x8xf32> -> vector<8x8xf32>
    %445 = vector.extract_strided_slice %386 {offsets = [0, 24], sizes = [8, 8], strides = [1, 1]} : vector<8x32xf32> to vector<8x8xf32>
    %446 = vector.extract_strided_slice %389 {offsets = [24, 0], sizes = [8, 8], strides = [1, 1]} : vector<32x8xf32> to vector<8x8xf32>
    %cst_158 = arith.constant dense<0.000000e+00> : vector<8x8xf32>
    %447 = tpu.matmul %445, %446, %cst_158 {dimension_numbers = #tpu.dot_dimension_numbers<[1], [0], [0], [1], [0, 0, 1, 1], [], []>} : vector<8x8xf32>, vector<8x8xf32>, vector<8x8xf32> -> vector<8x8xf32>
    %cst_159 = arith.constant 0.353553385 : f32
    %448 = vector.broadcast %cst_159 : f32 to vector<8x8xf32>
    %449 = arith.mulf %447, %448 : vector<8x8xf32>
    %450 = vector.broadcast %390 : vector<1x8xf32> to vector<8x8xf32>
    %451 = arith.addf %449, %450 : vector<8x8xf32>
    %cst_160 = arith.constant dense<0xFF800000> : vector<8xf32>
    %452 = vector.multi_reduction <maximumf>, %451, %cst_160 [1] : vector<8x8xf32> to vector<8xf32>
    %453 = vector.shape_cast %452 : vector<8xf32> to vector<8x1xf32>
    %454 = vector.broadcast %453 : vector<8x1xf32> to vector<8x8xf32>
    %455 = arith.subf %451, %454 : vector<8x8xf32>
    %456 = math.exp %455 : vector<8x8xf32>
    %cst_161 = arith.constant dense<0.000000e+00> : vector<8xf32>
    %457 = vector.multi_reduction <add>, %456, %cst_161 [1] : vector<8x8xf32> to vector<8xf32>
    %458 = vector.shape_cast %457 : vector<8xf32> to vector<8x1xf32>
    %459 = vector.broadcast %458 : vector<8x1xf32> to vector<8x8xf32>
    %460 = arith.divf %456, %459 : vector<8x8xf32>
    %461 = vector.extract_strided_slice %388 {offsets = [0, 24], sizes = [8, 8], strides = [1, 1]} : vector<8x32xf32> to vector<8x8xf32>
    %cst_162 = arith.constant dense<0.000000e+00> : vector<8x8xf32>
    %462 = tpu.matmul %460, %461, %cst_162 {dimension_numbers = #tpu.dot_dimension_numbers<[1], [0], [0], [1], [0, 0, 1, 1], [], []>} : vector<8x8xf32>, vector<8x8xf32>, vector<8x8xf32> -> vector<8x8xf32>
    %463 = tpu.concatenate %408, %426, %444, %462 in 1 : vector<8x8xf32>, vector<8x8xf32>, vector<8x8xf32>, vector<8x8xf32> -> vector<8x32xf32>
    %464 = tpu.concatenate %385, %463 in 0 : vector<8x32xf32>, vector<8x32xf32> -> vector<16x32xf32>
    %c1_163 = arith.constant 1 : index
    %c0_164 = arith.constant 0 : index
    %c0_165 = arith.constant 0 : index
    %465 = vector.load %arg10[%c1_163, %c0_164, %c0_165] : memref<2x32x32xf32, #tpu.memory_space<vmem>>, vector<1x32x32xf32>
    %466 = vector.shape_cast %465 : vector<1x32x32xf32> to vector<32x32xf32>
    %cst_166 = arith.constant dense<0.000000e+00> : vector<16x32xf32>
    %467 = tpu.matmul %464, %466, %cst_166 {dimension_numbers = #tpu.dot_dimension_numbers<[1], [0], [0], [1], [0, 0, 1, 1], [], []>} : vector<16x32xf32>, vector<32x32xf32>, vector<16x32xf32> -> vector<16x32xf32>
    %c1_167 = arith.constant 1 : index
    %c0_168 = arith.constant 0 : index
    %c0_169 = arith.constant 0 : index
    %468 = vector.load %arg11[%c1_167, %c0_168, %c0_169] : memref<2x1x32xf32, #tpu.memory_space<vmem>>, vector<1x1x32xf32>
    %469 = vector.shape_cast %468 : vector<1x1x32xf32> to vector<1x32xf32>
    %470 = vector.broadcast %469 : vector<1x32xf32> to vector<16x32xf32>
    %471 = arith.addf %467, %470 : vector<16x32xf32>
    %472 = arith.addf %471, %300 : vector<16x32xf32>
    %c1_170 = arith.constant 1 : index
    %c0_171 = arith.constant 0 : index
    %c0_172 = arith.constant 0 : index
    %473 = vector.load %arg12[%c1_170, %c0_171, %c0_172] : memref<2x1x32xf32, #tpu.memory_space<vmem>>, vector<1x1x32xf32>
    %474 = vector.shape_cast %473 : vector<1x1x32xf32> to vector<1x32xf32>
    %c1_173 = arith.constant 1 : index
    %c0_174 = arith.constant 0 : index
    %c0_175 = arith.constant 0 : index
    %475 = vector.load %arg13[%c1_173, %c0_174, %c0_175] : memref<2x1x32xf32, #tpu.memory_space<vmem>>, vector<1x1x32xf32>
    %476 = vector.shape_cast %475 : vector<1x1x32xf32> to vector<1x32xf32>
    %cst_176 = arith.constant dense<0.000000e+00> : vector<16xf32>
    %477 = vector.multi_reduction <add>, %472, %cst_176 [1] : vector<16x32xf32> to vector<16xf32>
    %478 = vector.shape_cast %477 : vector<16xf32> to vector<16x1xf32>
    %cst_177 = arith.constant 3.200000e+01 : f32
    %479 = vector.broadcast %cst_177 : f32 to vector<16x1xf32>
    %480 = arith.divf %478, %479 : vector<16x1xf32>
    %481 = vector.broadcast %480 : vector<16x1xf32> to vector<16x32xf32>
    %482 = arith.subf %472, %481 : vector<16x32xf32>
    %483 = arith.mulf %482, %482 : vector<16x32xf32>
    %cst_178 = arith.constant dense<0.000000e+00> : vector<16xf32>
    %484 = vector.multi_reduction <add>, %483, %cst_178 [1] : vector<16x32xf32> to vector<16xf32>
    %485 = vector.shape_cast %484 : vector<16xf32> to vector<16x1xf32>
    %cst_179 = arith.constant 3.200000e+01 : f32
    %486 = vector.broadcast %cst_179 : f32 to vector<16x1xf32>
    %487 = arith.divf %485, %486 : vector<16x1xf32>
    %488 = vector.broadcast %480 : vector<16x1xf32> to vector<16x32xf32>
    %489 = arith.subf %472, %488 : vector<16x32xf32>
    %cst_180 = arith.constant 9.99999996E-13 : f32
    %490 = vector.broadcast %cst_180 : f32 to vector<16x1xf32>
    %491 = arith.addf %487, %490 : vector<16x1xf32>
    %492 = math.rsqrt %491 : vector<16x1xf32>
    %493 = vector.broadcast %492 : vector<16x1xf32> to vector<16x32xf32>
    %494 = arith.mulf %489, %493 : vector<16x32xf32>
    %495 = vector.broadcast %474 : vector<1x32xf32> to vector<16x32xf32>
    %496 = arith.mulf %494, %495 : vector<16x32xf32>
    %497 = vector.broadcast %476 : vector<1x32xf32> to vector<16x32xf32>
    %498 = arith.addf %496, %497 : vector<16x32xf32>
    %c1_181 = arith.constant 1 : index
    %c0_182 = arith.constant 0 : index
    %c0_183 = arith.constant 0 : index
    %499 = vector.load %arg14[%c1_181, %c0_182, %c0_183] : memref<2x32x64xf32, #tpu.memory_space<vmem>>, vector<1x32x64xf32>
    %500 = vector.shape_cast %499 : vector<1x32x64xf32> to vector<32x64xf32>
    %cst_184 = arith.constant dense<0.000000e+00> : vector<16x64xf32>
    %501 = tpu.matmul %498, %500, %cst_184 {dimension_numbers = #tpu.dot_dimension_numbers<[1], [0], [0], [1], [0, 0, 1, 1], [], []>} : vector<16x32xf32>, vector<32x64xf32>, vector<16x64xf32> -> vector<16x64xf32>
    %c1_185 = arith.constant 1 : index
    %c0_186 = arith.constant 0 : index
    %c0_187 = arith.constant 0 : index
    %502 = vector.load %arg15[%c1_185, %c0_186, %c0_187] : memref<2x1x64xf32, #tpu.memory_space<vmem>>, vector<1x1x64xf32>
    %503 = vector.shape_cast %502 : vector<1x1x64xf32> to vector<1x64xf32>
    %504 = vector.broadcast %503 : vector<1x64xf32> to vector<16x64xf32>
    %505 = arith.addf %501, %504 : vector<16x64xf32>
    %506 = arith.mulf %505, %505 : vector<16x64xf32>
    %507 = arith.mulf %505, %506 : vector<16x64xf32>
    %cst_188 = arith.constant 4.471500e-02 : f32
    %508 = vector.broadcast %cst_188 : f32 to vector<16x64xf32>
    %509 = arith.mulf %508, %507 : vector<16x64xf32>
    %510 = arith.addf %505, %509 : vector<16x64xf32>
    %cst_189 = arith.constant 0.797884583 : f32
    %511 = vector.broadcast %cst_189 : f32 to vector<16x64xf32>
    %512 = arith.mulf %511, %510 : vector<16x64xf32>
    %513 = math.tanh %512 : vector<16x64xf32>
    %cst_190 = arith.constant 1.000000e+00 : f32
    %514 = vector.broadcast %cst_190 : f32 to vector<16x64xf32>
    %515 = arith.addf %514, %513 : vector<16x64xf32>
    %cst_191 = arith.constant 5.000000e-01 : f32
    %516 = vector.broadcast %cst_191 : f32 to vector<16x64xf32>
    %517 = arith.mulf %516, %515 : vector<16x64xf32>
    %518 = arith.mulf %505, %517 : vector<16x64xf32>
    %c1_192 = arith.constant 1 : index
    %c0_193 = arith.constant 0 : index
    %c0_194 = arith.constant 0 : index
    %519 = vector.load %arg16[%c1_192, %c0_193, %c0_194] : memref<2x64x32xf32, #tpu.memory_space<vmem>>, vector<1x64x32xf32>
    %520 = vector.shape_cast %519 : vector<1x64x32xf32> to vector<64x32xf32>
    %cst_195 = arith.constant dense<0.000000e+00> : vector<16x32xf32>
    %521 = tpu.matmul %518, %520, %cst_195 {dimension_numbers = #tpu.dot_dimension_numbers<[1], [0], [0], [1], [0, 0, 1, 1], [], []>} : vector<16x64xf32>, vector<64x32xf32>, vector<16x32xf32> -> vector<16x32xf32>
    %c1_196 = arith.constant 1 : index
    %c0_197 = arith.constant 0 : index
    %c0_198 = arith.constant 0 : index
    %522 = vector.load %arg17[%c1_196, %c0_197, %c0_198] : memref<2x1x32xf32, #tpu.memory_space<vmem>>, vector<1x1x32xf32>
    %523 = vector.shape_cast %522 : vector<1x1x32xf32> to vector<1x32xf32>
    %524 = vector.broadcast %523 : vector<1x32xf32> to vector<16x32xf32>
    %525 = arith.addf %521, %524 : vector<16x32xf32>
    %526 = arith.addf %525, %498 : vector<16x32xf32>
    %c1_199 = arith.constant 1 : index
    %c0_200 = arith.constant 0 : index
    %c0_201 = arith.constant 0 : index
    %527 = vector.load %arg18[%c1_199, %c0_200, %c0_201] : memref<2x1x32xf32, #tpu.memory_space<vmem>>, vector<1x1x32xf32>
    %528 = vector.shape_cast %527 : vector<1x1x32xf32> to vector<1x32xf32>
    %c1_202 = arith.constant 1 : index
    %c0_203 = arith.constant 0 : index
    %c0_204 = arith.constant 0 : index
    %529 = vector.load %arg19[%c1_202, %c0_203, %c0_204] : memref<2x1x32xf32, #tpu.memory_space<vmem>>, vector<1x1x32xf32>
    %530 = vector.shape_cast %529 : vector<1x1x32xf32> to vector<1x32xf32>
    %cst_205 = arith.constant dense<0.000000e+00> : vector<16xf32>
    %531 = vector.multi_reduction <add>, %526, %cst_205 [1] : vector<16x32xf32> to vector<16xf32>
    %532 = vector.shape_cast %531 : vector<16xf32> to vector<16x1xf32>
    %cst_206 = arith.constant 3.200000e+01 : f32
    %533 = vector.broadcast %cst_206 : f32 to vector<16x1xf32>
    %534 = arith.divf %532, %533 : vector<16x1xf32>
    %535 = vector.broadcast %534 : vector<16x1xf32> to vector<16x32xf32>
    %536 = arith.subf %526, %535 : vector<16x32xf32>
    %537 = arith.mulf %536, %536 : vector<16x32xf32>
    %cst_207 = arith.constant dense<0.000000e+00> : vector<16xf32>
    %538 = vector.multi_reduction <add>, %537, %cst_207 [1] : vector<16x32xf32> to vector<16xf32>
    %539 = vector.shape_cast %538 : vector<16xf32> to vector<16x1xf32>
    %cst_208 = arith.constant 3.200000e+01 : f32
    %540 = vector.broadcast %cst_208 : f32 to vector<16x1xf32>
    %541 = arith.divf %539, %540 : vector<16x1xf32>
    %542 = vector.broadcast %534 : vector<16x1xf32> to vector<16x32xf32>
    %543 = arith.subf %526, %542 : vector<16x32xf32>
    %cst_209 = arith.constant 9.99999996E-13 : f32
    %544 = vector.broadcast %cst_209 : f32 to vector<16x1xf32>
    %545 = arith.addf %541, %544 : vector<16x1xf32>
    %546 = math.rsqrt %545 : vector<16x1xf32>
    %547 = vector.broadcast %546 : vector<16x1xf32> to vector<16x32xf32>
    %548 = arith.mulf %543, %547 : vector<16x32xf32>
    %549 = vector.broadcast %528 : vector<1x32xf32> to vector<16x32xf32>
    %550 = arith.mulf %548, %549 : vector<16x32xf32>
    %551 = vector.broadcast %530 : vector<1x32xf32> to vector<16x32xf32>
    %552 = arith.addf %550, %551 : vector<16x32xf32>
    %553 = vector.extract_strided_slice %552 {offsets = [0, 0], sizes = [1, 32], strides = [1, 1]} : vector<16x32xf32> to vector<1x32xf32>
    %554 = vector.extract_strided_slice %552 {offsets = [8, 0], sizes = [1, 32], strides = [1, 1]} : vector<16x32xf32> to vector<1x32xf32>
    %555 = tpu.concatenate %553, %554 in 0 : vector<1x32xf32>, vector<1x32xf32> -> vector<2x32xf32>
    %c0_210 = arith.constant 0 : index
    %c0_211 = arith.constant 0 : index
    %556 = vector.load %arg20[%c0_210, %c0_211] : memref<32x32xf32, #tpu.memory_space<vmem>>, vector<32x32xf32>
    %cst_212 = arith.constant dense<0.000000e+00> : vector<2x32xf32>
    %557 = tpu.matmul %555, %556, %cst_212 {dimension_numbers = #tpu.dot_dimension_numbers<[1], [0], [0], [1], [0, 0, 1, 1], [], []>} : vector<2x32xf32>, vector<32x32xf32>, vector<2x32xf32> -> vector<2x32xf32>
    %c0_213 = arith.constant 0 : index
    %c0_214 = arith.constant 0 : index
    %558 = vector.load %arg21[%c0_213, %c0_214] : memref<1x32xf32, #tpu.memory_space<vmem>>, vector<1x32xf32>
    %559 = vector.broadcast %558 : vector<1x32xf32> to vector<2x32xf32>
    %560 = arith.addf %557, %559 : vector<2x32xf32>
    %561 = math.tanh %560 : vector<2x32xf32>
    %c0_215 = arith.constant 0 : index
    %c0_216 = arith.constant 0 : index
    %562 = vector.load %arg22[%c0_215, %c0_216] : memref<1x32xf32, #tpu.memory_space<vmem>>, vector<1x32xf32>
    %563 = vector.broadcast %562 : vector<1x32xf32> to vector<2x32xf32>
    %564 = arith.mulf %561, %563 : vector<2x32xf32>
    %cst_217 = arith.constant dense<0.000000e+00> : vector<2xf32>
    %565 = vector.multi_reduction <add>, %564, %cst_217 [1] : vector<2x32xf32> to vector<2xf32>
    %566 = vector.shape_cast %565 : vector<2xf32> to vector<2x1xf32>
    %c0_218 = arith.constant 0 : index
    %c0_219 = arith.constant 0 : index
    %567 = vector.load %arg23[%c0_218, %c0_219] : memref<1x1xf32, #tpu.memory_space<vmem>>, vector<1x1xf32>
    %568 = vector.broadcast %567 : vector<1x1xf32> to vector<2x1xf32>
    %569 = arith.addf %566, %568 : vector<2x1xf32>
    %c0_220 = arith.constant 0 : index
    %c0_221 = arith.constant 0 : index
    %570 = vector.load %arg24[%c0_220, %c0_221] : memref<2x1xf32, #tpu.memory_space<vmem>>, vector<2x1xf32>
    tpu.vector_store %arg24[%c0_220, %c0_221], %569 {strides = array<i32>} : memref<2x1xf32, #tpu.memory_space<vmem>>, vector<2x1xf32>,
    return
  }
}

</mosaic_0001>

<bundles_post_ra>
// kernel: bert_classifier_forward.1
= control target key start
LH: loop header
LB: loop body
LE: loop exit
PB: predicated region body
PF: predicated region fallthrough
CT: control target
= control target key end

     0   :  { %vm217_vm0 = vcmask 1043456   ;;  %v4868_v0 = vmov 0   ;;  %v83_v7 = vlaneseq  ;;  %vm130_vm1 = vcmask 1041408   ;;  %s4872_s29 = smov 88   ;;  %s5737_s30 = smov 64   ;;  %s5702_s1 = inlined_call_operand.vmem [shape: s32[16,1], index: 1, kind: input, shape index: {}]   ;;  %s5703_s0 = inlined_call_operand.vmem [shape: s32[16,1], index: 0, kind: input, shape index: {}]   ;;  %s5704_s3 = inlined_call_operand.vmem [shape: f32[100,32], index: 3, kind: input, shape index: {}]   ;;  %s5705_s2 = inlined_call_operand.vmem [shape: f32[2,8], index: 2, kind: input, shape index: {}]   ;;  %s5706_s5 = inlined_call_operand.vmem [shape: f32[2,32], index: 5, kind: input, shape index: {}]   ;;  %s5707_s4 = inlined_call_operand.vmem [shape: f32[16,32], index: 4, kind: input, shape index: {}]   ;;  %s5708_s8 = inlined_call_operand.vmem [shape: f32[2,32,96], index: 8, kind: input, shape index: {}]   ;;  %s5709_s6 = inlined_call_operand.vmem [shape: f32[1,32], index: 6, kind: input, shape index: {}]   ;;  %s5710_s7 = inlined_call_operand.vmem [shape: f32[1,32], index: 7, kind: input, shape index: {}]   ;;  %s5711_s9 = inlined_call_operand.vmem [shape: f32[2,1,96], index: 9, kind: input, shape index: {}]   ;;  %s5712_s10 = inlined_call_operand.vmem [shape: f32[2,32,32], index: 10, kind: input, shape index: {}]   ;;  %s5713_s11 = inlined_call_operand.vmem [shape: f32[2,1,32], index: 11, kind: input, shape index: {}]   ;;  %s5714_s14 = inlined_call_operand.vmem [shape: f32[2,32,64], index: 14, kind: input, shape index: {}]   ;;  %s5715_s12 = inlined_call_operand.vmem [shape: f32[2,1,32], index: 12, kind: input, shape index: {}]   ;;  %s5716_s13 = inlined_call_operand.vmem [shape: f32[2,1,32], index: 13, kind: input, shape index: {}]   ;;  %s5717_s16 = inlined_call_operand.vmem [shape: f32[2,64,32], index: 16, kind: input, shape index: {}]   ;;  %s5718_s15 = inlined_call_operand.vmem [shape: f32[2,1,64], index: 15, kind: input, shape index: {}]   ;;  %s5719_s17 = inlined_call_operand.vmem [shape: f32[2,1,32], index: 17, kind: input, shape index: {}]   ;;  %s5720_s18 = inlined_call_operand.vmem [shape: f32[2,1,32], index: 18, kind: input, shape index: {}]   ;;  %s5721_s19 = inlined_call_operand.vmem [shape: f32[2,1,32], index: 19, kind: input, shape index: {}]   ;;  %s5722_s20 = inlined_call_operand.vmem [shape: f32[32,32], index: 20, kind: input, shape index: {}]   ;;  %s5723_s23 = inlined_call_operand.<no memory space> [shape: f32[1,1], index: 23, kind: input, shape index: {}]   ;;  %s5724_s21 = inlined_call_operand.vmem [shape: f32[1,32], index: 21, kind: input, shape index: {}]   ;;  %s5725_s22 = inlined_call_operand.vmem [shape: f32[1,32], index: 22, kind: input, shape index: {}]   ;;  %s5726_s24 = inlined_call_operand.vmem [shape: f32[2,1], index: 24, kind: output, shape index: {}]  }
   0x1   :  { %5747 = sst [smem:[#allocation3_spill]] %s5702_s1  ;;  %4773 = vset.pattern.permute.xlu1 %v4868_v0  ;;  %4772 = vset.pattern.permute.xlu0 %v4868_v0  ;;  %v4869_v26 = vmov 0.0   ;;  %vm210_vm2 = vcmask 818176   ;;  %vm123_vm3 = vcmask 15360   ;;  %vm300_vm8 = vcmask 261120   ;;  %s4876_s25 = smov 112  }
   0x2   :  { %5748 = sst [smem:[#allocation4_spill]] %s5703_s0  ;;  %v5033_v9 = vshrl.u32 %v83_v7, 7  ;;  %v84_v27 = vand.u32 127, %v83_v7  ;;  %vm4870_vm9 = vmmov 0   ;;  %vm442_vm10 = vcmask 64512   ;;  %s4884_s28 = smov 24  }
   0x3   :  { %5749 = sst [smem:[#allocation5_spill]] %s5704_s3  ;;  %vm1124_vm11 = vcmask 130048   ;;  %vm1126_vm12 = vcmask 195584   ;;  %vm2077_vm13 = vcmask 523264   ;;  %vm4066_vm14 = vcmask 1040384  }
   0x4   :  { %5750 = sst [smem:[#allocation6_spill]] %s5705_s2  ;;  %v1208_v14 = vsub.s32 1, %v5033_v9  ;;  %s5735_s2 = smov 56   ;;  %vm4161_vm15 = vcmask 254976  }
   0x5   :  { %5751 = sst [smem:[#allocation7_spill]] %s5706_s5  ;;  %s5743_s5 = smov 104  }
   0x6   :  { %5752 = sst [smem:[#allocation8_spill]] %s5707_s4  ;;  %s5733_s4 = smov 40  }
   0x7   :  { %5753 = sst [smem:[#allocation9_spill]] %s5708_s8 }
   0x8   :  { %5754 = sst [smem:[#allocation10_spill]] %s5709_s6 }
   0x9   :  { %5755 = sst [smem:[#allocation11_spill]] %s5710_s7  ;;  %s5739_s7 = smov 72  }
   0xa   :  { %s5756_s27 = sld [smem:[#allocation3_spill]] }
   0xb   :  { %s5757_s3 = sld [smem:[#allocation4_spill]] }
   0xc   :  { %s5758_s6 = sld [smem:[#allocation5_spill]] }
   0xd   :  { %s5759_s8 = sld [smem:[#allocation6_spill]] }
   0xe   :  { %s5760_s1 = sld [smem:[#allocation7_spill]] }
   0xf   :  { %s5761_s26 = sld [smem:[#allocation8_spill]] }
  0x10   :  { %v81_v1 = vld [vmem:[%s5756_s27] sm:$0xff]  ;;  %v82_v5 = vld [vmem:[%s5756_s27 + $0x8] sm:$0xff]  ;;  %s5763_s0 = sld [smem:[#allocation10_spill]]  ;;  %s4883_s27 = smov 16  }
  0x11   :  { %v79_v2 = vld [vmem:[%s5757_s3] sm:$0xff]  ;;  %98 = vperm.xlu1 %4773, %v81_v1   ;;  %v80_v6 = vld [vmem:[%s5757_s3 + $0x8] sm:$0xff]  ;;  %s4871_s3 = smov 96  }
  0x12   :  { %86 = vperm.xlu0 %4772, %v79_v2   ;;  %v121_v3 = vld [vmem:[%s5758_s6 + $0x60] sm:$0xf]  ;;  %v120_v4 = vld [vmem:[%s5758_s6 + $0x58] sm:$0xff]  ;;  %v119_v8 = vld [vmem:[%s5758_s6 + $0x50] sm:$0xff] }
  0x13   :  { %4451 = vmatprep.subr.msk.mxu1 %vm217_vm0, %v121_v3  ;;  %v344_v10 = vld [vmem:[%s5759_s8] sm:$0x3]  ;;  %v118_v12 = vld [vmem:[%s5758_s6 + $0x48] sm:$0xff]  ;;  %v116_v17 = vld [vmem:[%s5758_s6 + $0x38] sm:$0xff]  ;;  %s5762_s8 = sld [smem:[#allocation9_spill]] }
  0x14   :  { %4452 = vmatpush3.msk.msra.mxu1 %vm217_vm0, %v121_v3  ;;  %v122_v11 = vld [vmem:[%s5760_s1] sm:$0x3]  ;;  %v345_v13 = vsub.f32 1.0, %v344_v10  ;;  %v115_v19 = vld [vmem:[%s5758_s6 + $0x30] sm:$0xff]  ;;  %v114_v20 = vld [vmem:[%s5758_s6 + $0x28] sm:$0xff]  ;;  %s5745_s1 = smov 120  }
  0x15   :  { %4453 = vmatprep.subr.mxu1 %v120_v4  ;;  %101 = vperm.xlu1 %4773, %v82_v5   ;;  %v117_v15 = vld [vmem:[%s5758_s6 + $0x40] sm:$0xff]  ;;  %v112_v22 = vld [vmem:[%s5758_s6 + $0x18] sm:$0xff]  ;;  %v111_v23 = vld [vmem:[%s5758_s6 + $0x10] sm:$0xff]  ;;  %vm4173_vm0 = vcmask 1024  }
  0x16   :  { %89 = vperm.xlu0 %4772, %v80_v6   ;;  %4454 = vmatpush3.msra.mxu1 %v120_v4  ;;  %v5048_v16 = vmul.f32 -1e+09, %v345_v13  ;;  %v113_v21 = vld [vmem:[%s5758_s6 + $0x20] sm:$0xff]  ;;  %v110_v24 = vld [vmem:[%s5758_s6 + $0x8] sm:$0xff] }
  0x17   :  { %4446 = vmatprep.subr.msk.mxu0 %vm130_vm1, %v122_v11  ;;  %4455 = vmatprep.subr.mxu1 %v119_v8  ;;  %v109_v25 = vld [vmem:[%s5758_s6] sm:$0xff]  ;;  %s5731_s6 = smov 48  }
  0x18   :  { %4447 = vmatpush3.msk.msra.mxu0 %vm130_vm1, %v122_v11  ;;  %4456 = vmatpush3.msra.mxu1 %v119_v8  ;;  %v5054_v18 = vrot.slane %v5048_v16, %v1208_v14  ;;  %v209_v36 = vld [vmem:[%s5761_s26] sm:$0xff]  ;;  %s5764_s26 = sld [smem:[#allocation11_spill]] }
  0x19   :  { %4457 = vmatprep.subr.mxu1 %v118_v12  ;;  %v350_v57 = vld [vmem:[%s5762_s8 + $0x18] sm:$0xff]  ;;  %v349_v58 = vld [vmem:[%s5762_s8 + $0x10] sm:$0xff]  ;;  %v348_v59 = vld [vmem:[%s5762_s8 + $0x8] sm:$0xff] }
  0x1a   :  { %4458 = vmatpush3.msra.mxu1 %v118_v12  ;;  %4480 = vmatprep.subr.mxu0 %v350_v57  ;;  %v347_v60 = vld [vmem:[%s5762_s8] sm:$0xff] }
  0x1b   :  { %4459 = vmatprep.subr.mxu1 %v117_v15  ;;  %v4189_v4 = vld [vmem:[%s5763_s0] ss:$0 sm:$0xff]  ;;  %s5741_s0 = smov 80  }
  0x1c   :  { %4460 = vmatpush3.msra.mxu1 %v117_v15  ;;  %v4191_v14 = vld [vmem:[%s5711_s9] ss:$0 sm:$0xff] }
  0x1d   :  { %4461 = vmatprep.subr.mxu1 %v116_v17 }
  0x1e   :  { %4462 = vmatpush3.msra.mxu1 %v116_v17  ;;  %v4190_v6 = vld [vmem:[%s5764_s26] ss:$0 sm:$0xff]  ;;  %s4882_s26 = smov 8  }
  0x1f   :  { %4463 = vmatprep.subr.mxu1 %v115_v19 }
  0x20   :  { %4464 = vmatpush3.msra.mxu1 %v115_v19 }
  0x21   :  { %4465 = vmatprep.subr.mxu1 %v114_v20 }
  0x22   :  { %4466 = vmatpush3.msra.mxu1 %v114_v20 }
  0x23   :  { %4467 = vmatprep.subr.mxu1 %v113_v21 }
  0x24   :  { %4468 = vmatpush3.msra.mxu1 %v113_v21 }
  0x25   :  { %4469 = vmatprep.subr.mxu1 %v112_v22 }
  0x26   :  { %4470 = vmatpush3.msra.mxu1 %v112_v22  ;;  %v520_v22 = vsub.s32 0, %v5033_v9 }
  0x27   :  { %4471 = vmatprep.subr.mxu1 %v111_v23 }
  0x28   :  { %4472 = vmatpush3.msra.mxu1 %v111_v23  ;;  %v5141_v23 = vrot.slane %v5048_v16, %v520_v22 }
  0x29   :  { %4473 = vmatprep.subr.mxu1 %v110_v24 }
  0x2a   :  { %4474 = vmatpush3.msra.mxu1 %v110_v24 }
  0x2b   :  { %4475 = vmatprep.subr.mxu1 %v109_v25 }
  0x2c   :  { %4476 = vmatpush3.msra.mxu1 %v109_v25 }
  0x2d   :  { %4491 = vmatprep.subr.mxu1 %v4869_v26 }
  0x8c   :  { %v99_v28 = vpop.permute.xlu1 %98 }
  0x8d   :  { %v87_v29 = vpop.permute.xlu0 %86  ;;  %vm103_vm5 = vcmp.eq.s32.totalorder %v99_v28, %v84_v27 }
  0x8e   :  { %vm91_vm4 = vcmp.eq.s32.totalorder %v87_v29, %v84_v27  ;;  %v4181_v31 = vsel %vm103_vm5, 1.0, %v4869_v26 }
  0x8f   :  { %v4179_v30 = vsel %vm91_vm4, 1.0, %v4869_v26  ;;  %4448 = vmatprep.mubr.msk.f32.mxu0 %vm123_vm3, %v4181_v31 }
  0x90   :  { %4477 = vmatprep.mubr.msk.f32.mxu1 %vm210_vm2, %v4179_v30  ;;  %v102_v32 = vpop.permute.xlu1 %101 }
  0x91   :  { %v90_v33 = vpop.permute.xlu0 %89  ;;  %vm104_vm6 = vcmp.eq.s32.totalorder %v102_v32, %v84_v27 }
  0x92   :  { %vm92_vm7 = vcmp.eq.s32.totalorder %v90_v33, %v84_v27  ;;  %v4182_v34 = vsel %vm104_vm6, 1.0, %v4869_v26 }
  0x93   :  { %v4180_v35 = vsel %vm92_vm7, 1.0, %v4869_v26  ;;  %4449 = vmatmul.mubr.msk.f32.vlgmr.msra.gmra.mxu0 %vm123_vm3, %v4182_v34 }
  0x94   :  { %4478 = vmatmul.mubr.msk.f32.vlgmr.msra.gmra.mxu1 %vm210_vm2, %v4180_v35  ;;  %4481 = vmatpush3.msra.mxu0 %v350_v57 }
  0x95   :  { %4482 = vmatprep.subr.mxu0 %v349_v58  ;;  %4493 = vmatprep.mubr.msk.f32.mxu1 %vm4870_vm9, %v4869_v26 }
  0x96   :  { %4483 = vmatpush3.msra.mxu0 %v349_v58 }
  0x97   :  { %4484 = vmatprep.subr.mxu0 %v348_v59 }
  0x98   :  { %4485 = vmatpush3.msra.mxu0 %v348_v59 }
  0x99   :  { %4486 = vmatprep.subr.mxu0 %v347_v60 }
  0x9a   :  { %4487 = vmatpush3.msra.mxu0 %v347_v60 }
  0x9b   :  { %4496 = vmatprep.subr.mxu0 %v4869_v26 }
 0x153   :  { %v4450_v37 = vpop.f32.mrf.mxu0 }
 0x154   :  { %v4479_v38 = vpop.f32.mrf.mxu1 }
 0x155   :  { %v293_v39 = vadd.f32 %v4479_v38, %v209_v36  ;;  %v200_v43 = vpop.f32.mrf.mxu0 }
 0x156   :  { %v287_v40 = vpop.f32.mrf.mxu1 }
 0x157   :  { %v288_v41 = vadd.f32 %v287_v40, %v209_v36  ;;  %v297_v42 = vadd.f32 %v4450_v37, %v293_v39 }
 0x159   :  { %v304_v44 = vsel %vm300_vm8, %v297_v42, 0.0  ;;  %v296_v45 = vadd.f32 %v288_v41, %v200_v43 }
 0x15a   :  { %305 = vadd.xlane.f32.xlu1 %v304_v44 }
 0x15b   :  { %v301_v46 = vsel %vm300_vm8, %v296_v45, 0.0 }
 0x15c   :  { %302 = vadd.xlane.f32.xlu0 %v301_v46 }
 0x1e3   :  { %v306_v47 = vpop.xlane.xlu1 %305 }
 0x1e4   :  { %v309_v48 = vmul.f32 0.03125, %v306_v47 }
 0x1e5   :  { %v303_v49 = vpop.xlane.xlu0 %302 }
 0x1e6   :  { %v308_v50 = vmul.f32 0.03125, %v303_v49  ;;  %v311_v51 = vsub.f32 %v297_v42, %v309_v48 }
 0x1e8   :  { %v310_v52 = vsub.f32 %v296_v45, %v308_v50  ;;  %v313_v55 = vmul.f32 %v311_v51, %v311_v51 }
 0x1ea   :  { %v312_v53 = vmul.f32 %v310_v52, %v310_v52  ;;  %v317_v56 = vsel %vm300_vm8, %v313_v55, 0.0 }
 0x1ec   :  { %v314_v54 = vsel %vm300_vm8, %v312_v53, 0.0 }
 0x1ed   :  { %315 = vadd.xlane.f32.xlu0 %v314_v54 }
 0x1f1   :  { %318 = vadd.xlane.f32.xlu0 %v317_v56 }
 0x276   :  { %v316_v61 = vpop.xlane.xlu0 %315 }
 0x277   :  { %v320_v62 = vmul.f32 0.03125, %v316_v61 }
 0x279   :  { %v322_v63 = vadd.f32 1e-12, %v320_v62 }
 0x27a   :  { %v319_v0 = vpop.xlane.xlu0 %318 }
 0x27b   :  { %4774 = vrsqrt.f32 %v322_v63  ;;  %v321_v1 = vmul.f32 0.03125, %v319_v0 }
 0x27d   :  { %v323_v2 = vadd.f32 1e-12, %v321_v1 }
 0x27f   :  { %4776 = vrsqrt.f32 %v323_v2 }
 0x288   :  { %v4775_v3 = vpop.eup %4774 }
 0x289   :  { %v326_v5 = vmul.f32 %v4775_v3, %v310_v52 }
 0x28b   :  { %v334_v7 = vmul.f32 %v4189_v4, %v326_v5 }
 0x28c   :  { %v4777_v8 = vpop.eup %4776 }
 0x28d   :  { %v327_v10 = vmul.f32 %v4777_v8, %v311_v51  ;;  %v5108_v11 = vadd.f32 %v4190_v6, %v334_v7 }
 0x28f   :  { %v335_v12 = vmul.f32 %v4189_v4, %v327_v10  ;;  %4488 = vmatprep.mubr.msk.f32.mxu0 %vm300_vm8, %v5108_v11 }
 0x291   :  { %v5112_v13 = vadd.f32 %v4190_v6, %v335_v12 }
 0x293   :  { %4489 = vmatmul.mubr.msk.f32.vlgmr.msra.gmra.mxu0 %vm300_vm8, %v5112_v13 }
 0x294   :  { %4498 = vmatprep.mubr.msk.f32.mxu0 %vm4870_vm9, %v4869_v26 }
 0x353   :  { %v4490_v15 = vpop.f32.mrf.mxu0 }
 0x354   :  { %v5123_v17 = vadd.f32 %v4490_v15, %v4191_v14 }
 0x355   :  { %v430_v19 = vpop.f32.mrf.mxu0 }
 0x356   :  { %v5125_v20 = vadd.f32 %v4191_v14, %v430_v19 }
 0x358   :  { %440 = vrot.lane.b32.xlu1 %v5125_v20, %s4871_s3 }
 0x35c   :  { %612 = vrot.lane.b32.xlu1 %v5125_v20, %s4872_s29 }
 0x360   :  { %610 = vrot.lane.b32.xlu1 %v5125_v20, %s5745_s1 }
 0x3ca   :  { %v441_v21 = vpop.permute.xlu1 %440 }
 0x3cb   :  { %4492 = vmatpush3.xpose.msk.msra.mxu1 %vm442_vm10, %v441_v21 }
 0x3cc   :  { %4516 = vmatprep.subr.mxu1 %v4869_v26 }
 0x3ce   :  { %4494 = vmatmul.mubr.msk.f32.vlgmr.msra.gmra.mxu1 %vm442_vm10, %v5125_v20  ;;  %v613_v36 = vpop.permute.xlu1 %612 }
 0x3cf   :  { %4518 = vmatprep.mubr.msk.f32.mxu1 %vm4870_vm9, %v4869_v26 }
 0x3d2   :  { %v611_v38 = vpop.permute.xlu1 %610 }
 0x48e   :  { %v513_v24 = vpop.f32.mrf.mxu1 }
 0x48f   :  { %v517_v25 = vmul.f32 0.35355338, %v513_v24 }
 0x490   :  { %v4495_v27 = vpop.f32.mrf.mxu1 }
 0x491   :  { %v522_v28 = vadd.f32 %v5141_v23, %v517_v25 }
 0x493   :  { %v523_v29 = vsel %vm442_vm10, %v522_v28, -inf }
 0x494   :  { %524 = vmax.xlane.f32.xlu0 %v523_v29 }
 0x51d   :  { %v525_v30 = vpop.xlane.xlu0 %524 }
 0x51e   :  { %v526_v31 = vsub.f32 %v522_v28, %v525_v30 }
 0x520   :  { %v527_v32 = vmul.f32 1.442695, %v526_v31 }
 0x522   :  { %4778 = vpow2.f32 %v527_v32 }
 0x52f   :  { %v4779_v33 = vpop.eup %4778 }
 0x530   :  { %v529_v34 = vsel %vm442_vm10, %v4779_v33, 0.0 }
 0x531   :  { %530 = vadd.xlane.f32.xlu0 %v529_v34 }
 0x547   :  { %534 = vrot.lane.b32.xlu0 %v5125_v20, %s5737_s30 }
 0x5ba   :  { %v531_v9 = vpop.xlane.xlu0 %530 }
 0x5bb   :  { %4780 = vrcp.f32 %v531_v9 }
 0x5be   :  { %v535_v16 = vpop.permute.xlu0 %534 }
 0x5bf   :  { %4497 = vmatpush3.msra.mxu0 %v535_v16 }
 0x5c0   :  { %4501 = vmatprep.subr.mxu0 %v4869_v26 }
 0x5c8   :  { %v4781_v35 = vpop.eup %4780 }
 0x5c9   :  { %v533_v37 = vmul.f32 %v4781_v35, %v4779_v33 }
 0x5cb   :  { %4499 = vmatmul.mubr.msk.f32.vlgmr.msra.gmra.mxu0 %vm442_vm10, %v533_v37 }
 0x5cc   :  { %4502 = vmatpush3.xpose.msk.msra.mxu0 %vm442_vm10, %v613_v36  ;;  %4503 = vmatprep.mubr.msk.f32.mxu0 %vm4870_vm9, %v4869_v26 }
 0x5cd   :  { %4506 = vmatprep.subr.mxu0 %v4869_v26 }
 0x5cf   :  { %4504 = vmatmul.mubr.msk.f32.vlgmr.msra.gmra.mxu0 %vm442_vm10, %v611_v38 }
 0x5d0   :  { %4508 = vmatprep.mubr.msk.f32.mxu0 %vm4870_vm9, %v4869_v26 }
 0x68b   :  { %v5157_v39 = vpop.f32.mrf.mxu0 }
 0x68d   :  { %v4500_v40 = vpop.f32.mrf.mxu0 }
 0x68f   :  { %v684_v41 = vpop.f32.mrf.mxu0 }
 0x690   :  { %v688_v42 = vmul.f32 0.35355338, %v684_v41 }
 0x691   :  { %v4505_v43 = vpop.f32.mrf.mxu0 }
 0x692   :  { %v689_v44 = vadd.f32 %v688_v42, %v5141_v23 }
 0x694   :  { %v690_v45 = vsel %vm442_vm10, %v689_v44, -inf }
 0x695   :  { %691 = vmax.xlane.f32.xlu1 %v690_v45 }
 0x6a6   :  { %701 = vrot.lane.b32.xlu1 %v5125_v20, %s5735_s2 }
 0x6aa   :  { %777 = vrot.lane.b32.xlu1 %v5125_v20, %s4876_s25 }
 0x6ae   :  { %946 = vrot.lane.b32.xlu1 %v5125_v20, %s5739_s7 }
 0x6b2   :  { %1129 = vrot.lane.b32.xlu1 %v5123_v17, %s4871_s3 }
 0x6b6   :  { %1298 = vrot.lane.b32.xlu1 %v5123_v17, %s5745_s1  ;;  %s5766_s1 = smov 104  }
 0x6ba   :  { %1465 = vrot.lane.b32.xlu1 %v5123_v17, %s4876_s25 }
 0x6be   :  { %1632 = vrot.lane.b32.xlu1 %v5123_v17, %s5743_s5 }
 0x71e   :  { %v692_v46 = vpop.xlane.xlu1 %691 }
 0x71f   :  { %v693_v47 = vsub.f32 %v689_v44, %v692_v46 }
 0x721   :  { %v694_v48 = vmul.f32 1.442695, %v693_v47 }
 0x722   :  { %v702_v49 = vpop.permute.xlu1 %701 }
 0x723   :  { %4782 = vpow2.f32 %v694_v48  ;;  %4507 = vmatpush3.msra.mxu0 %v702_v49 }
 0x724   :  { %4511 = vmatprep.subr.mxu0 %v4869_v26 }
 0x726   :  { %v778_v53 = vpop.permute.xlu1 %777 }
 0x72a   :  { %v947_v57 = vpop.permute.xlu1 %946 }
 0x72e   :  { %v1130_v59 = vpop.permute.xlu1 %1129 }
 0x730   :  { %v4783_v50 = vpop.eup %4782 }
 0x731   :  { %v696_v51 = vsel %vm442_vm10, %v4783_v50, 0.0 }
 0x732   :  { %697 = vadd.xlane.f32.xlu0 %v696_v51  ;;  %v1299_v61 = vpop.permute.xlu1 %1298 }
 0x736   :  { %v1466_v63 = vpop.permute.xlu1 %1465 }
 0x73a   :  { %v1633_v1 = vpop.permute.xlu1 %1632 }
 0x748   :  { %779 = vrot.lane.b32.xlu0 %v5125_v20, %s5741_s0 }
 0x74c   :  { %944 = vrot.lane.b32.xlu0 %v5125_v20, %s5743_s5 }
 0x750   :  { %1300 = vrot.lane.b32.xlu0 %v5123_v17, %s4872_s29 }
 0x754   :  { %1467 = vrot.lane.b32.xlu0 %v5123_v17, %s5741_s0 }
 0x758   :  { %1634 = vrot.lane.b32.xlu0 %v5123_v17, %s5739_s7 }
 0x7bb   :  { %v698_v52 = vpop.xlane.xlu0 %697 }
 0x7bc   :  { %4784 = vrcp.f32 %v698_v52 }
 0x7bf   :  { %v780_v54 = vpop.permute.xlu0 %779 }
 0x7c3   :  { %v945_v58 = vpop.permute.xlu0 %944 }
 0x7c7   :  { %v1301_v60 = vpop.permute.xlu0 %1300 }
 0x7c9   :  { %v4785_v55 = vpop.eup %4784 }
 0x7ca   :  { %v700_v56 = vmul.f32 %v4785_v55, %v4783_v50 }
 0x7cb   :  { %v1468_v62 = vpop.permute.xlu0 %1467 }
 0x7cc   :  { %4509 = vmatmul.mubr.msk.f32.vlgmr.msra.gmra.mxu0 %vm442_vm10, %v700_v56 }
 0x7cd   :  { %4512 = vmatpush3.xpose.msk.msra.mxu0 %vm442_vm10, %v780_v54  ;;  %4513 = vmatprep.mubr.msk.f32.mxu0 %vm4870_vm9, %v4869_v26 }
 0x7ce   :  { %4521 = vmatprep.subr.mxu0 %v4869_v26 }
 0x7cf   :  { %v1635_v0 = vpop.permute.xlu0 %1634 }
 0x7d0   :  { %4514 = vmatmul.mubr.msk.f32.vlgmr.msra.gmra.mxu0 %vm442_vm10, %v778_v53 }
 0x7d1   :  { %4522 = vmatpush3.xpose.msk.msra.mxu0 %vm442_vm10, %v947_v57  ;;  %4523 = vmatprep.mubr.msk.f32.mxu0 %vm4870_vm9, %v4869_v26 }
 0x7d2   :  { %4531 = vmatprep.subr.mxu0 %v4869_v26 }
 0x7d4   :  { %4524 = vmatmul.mubr.msk.f32.vlgmr.msra.gmra.mxu0 %vm442_vm10, %v945_v58 }
 0x7d5   :  { %4532 = vmatpush3.xpose.msk.msra.mxu0 %vm442_vm10, %v1130_v59  ;;  %4533 = vmatprep.mubr.msk.f32.mxu0 %vm4870_vm9, %v4869_v26 }
 0x7d6   :  { %4541 = vmatprep.subr.mxu0 %v4869_v26 }
 0x7d8   :  { %4534 = vmatmul.mubr.msk.f32.vlgmr.msra.gmra.mxu0 %vm442_vm10, %v5123_v17 }
 0x7d9   :  { %4542 = vmatpush3.xpose.msk.msra.mxu0 %vm442_vm10, %v1301_v60  ;;  %4543 = vmatprep.mubr.msk.f32.mxu0 %vm4870_vm9, %v4869_v26 }
 0x7da   :  { %4551 = vmatprep.subr.mxu0 %v4869_v26 }
 0x7dc   :  { %4544 = vmatmul.mubr.msk.f32.vlgmr.msra.gmra.mxu0 %vm442_vm10, %v1299_v61 }
 0x7dd   :  { %4552 = vmatpush3.xpose.msk.msra.mxu0 %vm442_vm10, %v1468_v62  ;;  %4553 = vmatprep.mubr.msk.f32.mxu0 %vm4870_vm9, %v4869_v26 }
 0x7de   :  { %4561 = vmatprep.subr.mxu0 %v4869_v26 }
 0x7e0   :  { %4554 = vmatmul.mubr.msk.f32.vlgmr.msra.gmra.mxu0 %vm442_vm10, %v1466_v63 }
 0x7e1   :  { %4562 = vmatpush3.xpose.msk.msra.mxu0 %vm442_vm10, %v1635_v0  ;;  %4563 = vmatprep.mubr.msk.f32.mxu0 %vm4870_vm9, %v4869_v26 }
 0x7e4   :  { %4564 = vmatmul.mubr.msk.f32.vlgmr.msra.gmra.mxu0 %vm442_vm10, %v1633_v1 }
 0x88c   :  { %v5218_v2 = vpop.f32.mrf.mxu0 }
 0x88e   :  { %v4510_v3 = vpop.f32.mrf.mxu0 }
 0x890   :  { %v851_v4 = vpop.f32.mrf.mxu0 }
 0x891   :  { %v855_v5 = vmul.f32 0.35355338, %v851_v4 }
 0x892   :  { %v4515_v6 = vpop.f32.mrf.mxu0 }
 0x893   :  { %v856_v7 = vadd.f32 %v855_v5, %v5141_v23 }
 0x894   :  { %v1018_v8 = vpop.f32.mrf.mxu0 }
 0x895   :  { %v1022_v10 = vmul.f32 0.35355338, %v1018_v8  ;;  %v857_v12 = vsel %vm442_vm10, %v856_v7, -inf }
 0x896   :  { %858 = vmax.xlane.f32.xlu0 %v857_v12  ;;  %v4525_v14 = vpop.f32.mrf.mxu0 }
 0x897   :  { %v1023_v15 = vadd.f32 %v1022_v10, %v5141_v23 }
 0x898   :  { %v1201_v19 = vpop.f32.mrf.mxu0 }
 0x899   :  { %v1205_v21 = vmul.f32 0.35355338, %v1201_v19  ;;  %v1024_v22 = vsel %vm442_vm10, %v1023_v15, -inf }
 0x89a   :  { %1025 = vmax.xlane.f32.xlu1 %v1024_v22  ;;  %v4535_v24 = vpop.f32.mrf.mxu0 }
 0x89b   :  { %v1210_v25 = vadd.f32 %v5054_v18, %v1205_v21 }
 0x89c   :  { %v1372_v27 = vpop.f32.mrf.mxu0 }
 0x89d   :  { %v1376_v28 = vmul.f32 0.35355338, %v1372_v27  ;;  %v1211_v29 = vsel %vm442_vm10, %v1210_v25, -inf }
 0x89e   :  { %1212 = vmax.xlane.f32.xlu0 %v1211_v29  ;;  %v4545_v30 = vpop.f32.mrf.mxu0 }
 0x89f   :  { %v1377_v31 = vadd.f32 %v1376_v28, %v5054_v18 }
 0x8a0   :  { %v1539_v32 = vpop.f32.mrf.mxu0 }
 0x8a1   :  { %v1543_v33 = vmul.f32 0.35355338, %v1539_v32  ;;  %v1378_v34 = vsel %vm442_vm10, %v1377_v31, -inf }
 0x8a2   :  { %1379 = vmax.xlane.f32.xlu0 %v1378_v34  ;;  %v4555_v9 = vpop.f32.mrf.mxu0 }
 0x8a3   :  { %v1544_v16 = vadd.f32 %v1543_v33, %v5054_v18 }
 0x8a4   :  { %v1706_v35 = vpop.f32.mrf.mxu0 }
 0x8a5   :  { %v1710_v36 = vmul.f32 0.35355338, %v1706_v35  ;;  %v1545_v37 = vsel %vm442_vm10, %v1544_v16, -inf }
 0x8a6   :  { %1546 = vmax.xlane.f32.xlu1 %v1545_v37  ;;  %v4565_v38 = vpop.f32.mrf.mxu0 }
 0x8a7   :  { %v1711_v40 = vadd.f32 %v1710_v36, %v5054_v18 }
 0x8a9   :  { %v1712_v41 = vsel %vm442_vm10, %v1711_v40, -inf }
 0x8aa   :  { %1713 = vmax.xlane.f32.xlu0 %v1712_v41 }
 0x8b7   :  { %868 = vrot.lane.b32.xlu1 %v5125_v20, %s5731_s6 }
 0x8bb   :  { %1222 = vrot.lane.b32.xlu1 %v5123_v17, %s5737_s30  ;;  %s5767_s30 = smov 80  }
 0x8c0   :  { %1035 = vrot.lane.b32.xlu0 %v5125_v20, %s5733_s4 }
 0x91f   :  { %v859_v42 = vpop.xlane.xlu0 %858 }
 0x920   :  { %v860_v43 = vsub.f32 %v856_v7, %v859_v42  ;;  %v1817_v42 = vld [vmem:[%s5712_s10 + $0x18] sm:$0xff] }
 0x921   :  { %4571 = vmatprep.subr.mxu0 %v1817_v42 }
 0x922   :  { %v861_v44 = vmul.f32 1.442695, %v860_v43  ;;  %v1816_v43 = vld [vmem:[%s5712_s10 + $0x10] sm:$0xff]  ;;  %4572 = vmatpush3.msra.mxu0 %v1817_v42 }
 0x923   :  { %v1026_v45 = vpop.xlane.xlu1 %1025  ;;  %4573 = vmatprep.subr.mxu0 %v1816_v43 }
 0x924   :  { %4786 = vpow2.f32 %v861_v44  ;;  %v1027_v46 = vsub.f32 %v1023_v15, %v1026_v45  ;;  %v1815_v44 = vld [vmem:[%s5712_s10 + $0x8] sm:$0xff]  ;;  %4574 = vmatpush3.msra.mxu0 %v1816_v43  ;;  %v1814_v45 = vld [vmem:[%s5712_s10] sm:$0xff] }
 0x925   :  { %4575 = vmatprep.subr.mxu0 %v1815_v44 }
 0x926   :  { %v1028_v47 = vmul.f32 1.442695, %v1027_v46  ;;  %4576 = vmatpush3.msra.mxu0 %v1815_v44  ;;  %v2069_v44 = vld [vmem:[%s5717_s16 + $0x38] sm:$0xff] }
 0x927   :  { %v1213_v48 = vpop.xlane.xlu0 %1212  ;;  %4577 = vmatprep.subr.mxu0 %v1814_v45 }
 0x928   :  { %4788 = vpow2.f32 %v1028_v47  ;;  %v1214_v0 = vsub.f32 %v1210_v25, %v1213_v48  ;;  %4578 = vmatpush3.msra.mxu0 %v1814_v45  ;;  %v2068_v45 = vld [vmem:[%s5717_s16 + $0x30] sm:$0xff] }
 0x929   :  { %4593 = vmatprep.subr.mxu0 %v2069_v44 }
 0x92a   :  { %v1215_v1 = vmul.f32 1.442695, %v1214_v0 }
 0x92b   :  { %v1380_v49 = vpop.xlane.xlu0 %1379 }
 0x92c   :  { %v1381_v50 = vsub.f32 %v1377_v31, %v1380_v49 }
 0x92e   :  { %v1382_v51 = vmul.f32 1.442695, %v1381_v50 }
 0x92f   :  { %v1547_v52 = vpop.xlane.xlu1 %1546 }
 0x930   :  { %4790 = vpow2.f32 %v1382_v51  ;;  %v1548_v3 = vsub.f32 %v1544_v16, %v1547_v52 }
 0x931   :  { %v4787_v53 = vpop.eup %4786 }
 0x932   :  { %v863_v54 = vsel %vm442_vm10, %v4787_v53, 0.0  ;;  %v1549_v4 = vmul.f32 1.442695, %v1548_v3 }
 0x933   :  { %864 = vadd.xlane.f32.xlu1 %v863_v54  ;;  %v869_v55 = vpop.permute.xlu1 %868  ;;  %v1714_v20 = vpop.xlane.xlu0 %1713 }
 0x934   :  { %v1715_v56 = vsub.f32 %v1711_v40, %v1714_v20  ;;  %4517 = vmatpush3.msra.mxu1 %v869_v55 }
 0x935   :  { %v4789_v57 = vpop.eup %4788  ;;  %4526 = vmatprep.subr.mxu1 %v4869_v26 }
 0x936   :  { %v1716_v58 = vmul.f32 1.442695, %v1715_v56  ;;  %v1030_v59 = vsel %vm442_vm10, %v4789_v57, 0.0 }
 0x937   :  { %1031 = vadd.xlane.f32.xlu0 %v1030_v59  ;;  %v1223_v10 = vpop.permute.xlu1 %1222  ;;  %v1036_v12 = vpop.permute.xlu0 %1035 }
 0x938   :  { %4792 = vpow2.f32 %v1716_v58 }
 0x939   :  { %4794 = vpow2.f32 %v1215_v1 }
 0x93a   :  { %4796 = vpow2.f32 %v1549_v4 }
 0x93d   :  { %v4791_v60 = vpop.eup %4790 }
 0x93e   :  { %v1384_v61 = vsel %vm442_vm10, %v4791_v60, 0.0 }
 0x93f   :  { %1385 = vadd.xlane.f32.xlu0 %v1384_v61 }
 0x944   :  { %1389 = vrot.lane.b32.xlu1 %v5123_v17, %s5735_s2  ;;  %s5769_s2 = smov 64  }
 0x945   :  { %v5244_v62 = vpop.eup %4792 }
 0x946   :  { %v1718_v63 = vsel %vm442_vm10, %v5244_v62, 0.0  ;;  %v4795_v5 = vpop.eup %4794 }
 0x947   :  { %1719 = vadd.xlane.f32.xlu0 %v1718_v63  ;;  %v1217_v6 = vsel %vm442_vm10, %v4795_v5, 0.0  ;;  %v4797_v7 = vpop.eup %4796 }
 0x948   :  { %v1551_v8 = vsel %vm442_vm10, %v4797_v7, 0.0 }
 0x95d   :  { %1556 = vrot.lane.b32.xlu0 %v5123_v17, %s5731_s6 }
 0x961   :  { %1112 = vrot.lane.b32.xlu0 %v5218_v2, %s4882_s26 }
 0x968   :  { %1218 = vadd.xlane.f32.xlu1 %v1217_v6 }
 0x96c   :  { %1552 = vadd.xlane.f32.xlu1 %v1551_v8 }
 0x97d   :  { %1723 = vrot.lane.b32.xlu1 %v5123_v17, %s5733_s4  ;;  %s5765_s4 = smov 120  }
 0x9bc   :  { %v865_v14 = vpop.xlane.xlu1 %864 }
 0x9bd   :  { %4798 = vrcp.f32 %v865_v14 }
 0x9c0   :  { %v1032_v15 = vpop.xlane.xlu0 %1031  ;;  %v1390_v17 = vpop.permute.xlu1 %1389 }
 0x9c1   :  { %4800 = vrcp.f32 %v1032_v15 }
 0x9c8   :  { %v1386_v24 = vpop.xlane.xlu0 %1385 }
 0x9ca   :  { %v4799_v19 = vpop.eup %4798 }
 0x9cb   :  { %v867_v21 = vmul.f32 %v4799_v19, %v4787_v53 }
 0x9cd   :  { %4519 = vmatmul.mubr.msk.f32.vlgmr.msra.gmra.mxu1 %vm442_vm10, %v867_v21 }
 0x9ce   :  { %v4801_v2 = vpop.eup %4800  ;;  %4527 = vmatpush3.msra.mxu1 %v1036_v12  ;;  %4528 = vmatprep.mubr.msk.f32.mxu1 %vm4870_vm9, %v4869_v26 }
 0x9cf   :  { %4536 = vmatprep.subr.mxu1 %v4869_v26  ;;  %v1034_v22 = vmul.f32 %v4801_v2, %v4789_v57 }
 0x9d0   :  { %v1720_v28 = vpop.xlane.xlu0 %1719 }
 0x9d1   :  { %4529 = vmatmul.mubr.msk.f32.vlgmr.msra.gmra.mxu1 %vm442_vm10, %v1034_v22 }
 0x9d2   :  { %4537 = vmatpush3.msra.mxu1 %v1223_v10  ;;  %4538 = vmatprep.mubr.msk.f32.mxu1 %vm4870_vm9, %v4869_v26 }
 0x9d3   :  { %4546 = vmatprep.subr.mxu1 %v4869_v26 }
 0x9d4   :  { %v1557_v34 = vpop.permute.xlu0 %1556 }
 0x9d8   :  { %v1113_v54 = vpop.permute.xlu0 %1112 }
 0x9d9   :  { %v1123_v20 = vsel %vm442_vm10, %v5157_v39, %v1113_v54  ;;  %v4218_v39 = vld [vmem:[%s5713_s11] ss:$0 sm:$0xff] }
 0x9f1   :  { %v1219_v25 = vpop.xlane.xlu1 %1218 }
 0x9f2   :  { %4802 = vrcp.f32 %v1219_v25  ;;  %v1954_v25 = vld [vmem:[%s5714_s14 + $0x10] sm:$0xff] }
 0x9f3   :  { %4804 = vrcp.f32 %v1386_v24 }
 0x9f5   :  { %v1553_v27 = vpop.xlane.xlu1 %1552 }
 0x9f6   :  { %4806 = vrcp.f32 %v1553_v27  ;;  %v1953_v27 = vld [vmem:[%s5714_s14 + $0x8] sm:$0xff] }
 0x9f7   :  { %4808 = vrcp.f32 %v1720_v28  ;;  %v1952_v28 = vld [vmem:[%s5714_s14] sm:$0xff] }
 0x9f9   :  { %v1724_v35 = vpop.permute.xlu1 %1723 }
 0x9ff   :  { %v4803_v29 = vpop.eup %4802 }
 0xa00   :  { %v1221_v30 = vmul.f32 %v4803_v29, %v4795_v5  ;;  %v4805_v31 = vpop.eup %4804 }
 0xa01   :  { %v1388_v32 = vmul.f32 %v4805_v31, %v4791_v60 }
 0xa02   :  { %4539 = vmatmul.mubr.msk.f32.vlgmr.msra.gmra.mxu1 %vm442_vm10, %v1221_v30 }
 0xa03   :  { %4547 = vmatpush3.msra.mxu1 %v1390_v17  ;;  %4548 = vmatprep.mubr.msk.f32.mxu1 %vm4870_vm9, %v4869_v26  ;;  %v4807_v33 = vpop.eup %4806 }
 0xa04   :  { %4556 = vmatprep.subr.mxu1 %v4869_v26  ;;  %v1555_v9 = vmul.f32 %v4807_v33, %v4797_v7  ;;  %v4809_v16 = vpop.eup %4808 }
 0xa05   :  { %v1722_v36 = vmul.f32 %v4809_v16, %v5244_v62  ;;  %v4221_v16 = vld [vmem:[%s5715_s12] ss:$0 sm:$0xff] }
 0xa06   :  { %4549 = vmatmul.mubr.msk.f32.vlgmr.msra.gmra.mxu1 %vm442_vm10, %v1388_v32 }
 0xa07   :  { %4557 = vmatpush3.msra.mxu1 %v1557_v34  ;;  %4558 = vmatprep.mubr.msk.f32.mxu1 %vm4870_vm9, %v4869_v26 }
 0xa08   :  { %4566 = vmatprep.subr.mxu1 %v4869_v26 }
 0xa0a   :  { %4559 = vmatmul.mubr.msk.f32.vlgmr.msra.gmra.mxu1 %vm442_vm10, %v1555_v9 }
 0xa0b   :  { %4567 = vmatpush3.msra.mxu1 %v1724_v35  ;;  %4568 = vmatprep.mubr.msk.f32.mxu1 %vm4870_vm9, %v4869_v26 }
 0xa0e   :  { %4569 = vmatmul.mubr.msk.f32.vlgmr.msra.gmra.mxu1 %vm442_vm10, %v1722_v36  ;;  %v4222_v36 = vld [vmem:[%s5716_s13] ss:$0 sm:$0xff] }
 0xa8d   :  { %v940_v37 = vpop.f32.mrf.mxu1 }
 0xa8e   :  { %1116 = vrot.lane.b32.xlu1 %v940_v37, %s4883_s27 }
 0xa8f   :  { %v4520_v38 = vpop.f32.mrf.mxu1 }
 0xa91   :  { %v1107_v40 = vpop.f32.mrf.mxu1 }
 0xa92   :  { %1120 = vrot.lane.b32.xlu1 %v1107_v40, %s4884_s28 }
 0xa93   :  { %v4530_v41 = vpop.f32.mrf.mxu1 }
 0xac2   :  { %v1294_v46 = vpop.f32.mrf.mxu1 }
 0xac4   :  { %v4540_v47 = vpop.f32.mrf.mxu1 }
 0xac5   :  { %v2066_v47 = vld [vmem:[%s5717_s16 + $0x20] sm:$0xff] }
 0xac6   :  { %v1461_v48 = vpop.f32.mrf.mxu1 }
 0xac7   :  { %1800 = vrot.lane.b32.xlu0 %v1461_v48, %s4882_s26  ;;  %v2065_v48 = vld [vmem:[%s5717_s16 + $0x18] sm:$0xff] }
 0xac8   :  { %v4550_v49 = vpop.f32.mrf.mxu1 }
 0xac9   :  { %v2064_v49 = vld [vmem:[%s5717_s16 + $0x10] sm:$0xff] }
 0xaca   :  { %v1628_v50 = vpop.f32.mrf.mxu1 }
 0xacb   :  { %1804 = vrot.lane.b32.xlu0 %v1628_v50, %s4883_s27  ;;  %v2063_v50 = vld [vmem:[%s5717_s16 + $0x8] sm:$0xff] }
 0xacc   :  { %v4560_v51 = vpop.f32.mrf.mxu1 }
 0xacd   :  { %v2062_v51 = vld [vmem:[%s5717_s16] sm:$0xff] }
 0xace   :  { %v1795_v52 = vpop.f32.mrf.mxu1 }
 0xacf   :  { %1808 = vrot.lane.b32.xlu1 %v1795_v52, %s4884_s28  ;;  %v4223_v52 = vld [vmem:[%s5718_s15] ss:$0 sm:$0xff] }
 0xad0   :  { %v4570_v53 = vpop.f32.mrf.mxu1 }
 0xb00   :  { %v1117_v55 = vpop.permute.xlu1 %1116 }
 0xb01   :  { %v1125_v56 = vsel %vm1124_vm11, %v1123_v20, %v1117_v55 }
 0xb04   :  { %v1121_v57 = vpop.permute.xlu1 %1120 }
 0xb05   :  { %v1127_v58 = vsel %vm1126_vm12, %v1125_v56, %v1121_v57 }
 0xb06   :  { %4579 = vmatprep.mubr.msk.f32.mxu0 %vm300_vm8, %v1127_v58 }
 0xb39   :  { %v1801_v59 = vpop.permute.xlu0 %1800 }
 0xb3a   :  { %v1811_v61 = vsel %vm442_vm10, %v1294_v46, %v1801_v59  ;;  %v2067_v46 = vld [vmem:[%s5717_s16 + $0x28] sm:$0xff] }
 0xb3d   :  { %v1805_v60 = vpop.permute.xlu0 %1804 }
 0xb3e   :  { %v1812_v62 = vsel %vm1124_vm11, %v1811_v61, %v1805_v60 }
 0xb41   :  { %v1809_v63 = vpop.permute.xlu1 %1808 }
 0xb42   :  { %v1813_v0 = vsel %vm1126_vm12, %v1812_v62, %v1809_v63 }
 0xb43   :  { %4580 = vmatmul.mubr.msk.f32.vlgmr.msra.gmra.mxu0 %vm300_vm8, %v1813_v0 }
 0xb44   :  { %4594 = vmatpush3.msra.mxu0 %v2069_v44  ;;  %v4229_v44 = vld [vmem:[%s5720_s18] ss:$0 sm:$0xff] }
 0xb45   :  { %4595 = vmatprep.subr.mxu0 %v2068_v45 }
 0xb46   :  { %4596 = vmatpush3.msra.mxu0 %v2068_v45 }
 0xb47   :  { %4597 = vmatprep.subr.mxu0 %v2067_v46 }
 0xb48   :  { %4598 = vmatpush3.msra.mxu0 %v2067_v46 }
 0xb49   :  { %4599 = vmatprep.subr.mxu0 %v2066_v47 }
 0xb4a   :  { %4600 = vmatpush3.msra.mxu0 %v2066_v47 }
 0xb4b   :  { %4601 = vmatprep.subr.mxu0 %v2065_v48 }
 0xb4c   :  { %4602 = vmatpush3.msra.mxu0 %v2065_v48 }
 0xb4d   :  { %4603 = vmatprep.subr.mxu0 %v2064_v49 }
 0xb4e   :  { %4604 = vmatpush3.msra.mxu0 %v2064_v49  ;;  %v4230_v49 = vld [vmem:[%s5721_s19] ss:$0 sm:$0xff] }
 0xb4f   :  { %4605 = vmatprep.subr.mxu0 %v2063_v50 }
 0xb50   :  { %4606 = vmatpush3.msra.mxu0 %v2063_v50 }
 0xb51   :  { %4607 = vmatprep.subr.mxu0 %v2062_v51 }
 0xb52   :  { %4608 = vmatpush3.msra.mxu0 %v2062_v51 }
 0xb53   :  { %4633 = vmatprep.subr.mxu0 %v4869_v26 }
 0xc03   :  { %v4581_v1 = vpop.f32.mrf.mxu0 }
 0xc04   :  { %v1903_v3 = vadd.f32 %v4581_v1, %v4218_v39 }
 0xc05   :  { %v1897_v4 = vpop.f32.mrf.mxu0 }
 0xc06   :  { %v1898_v5 = vadd.f32 %v4218_v39, %v1897_v4  ;;  %v1907_v6 = vadd.f32 %v1903_v3, %v5112_v13 }
 0xc08   :  { %v1913_v7 = vsel %vm300_vm8, %v1907_v6, 0.0  ;;  %v1906_v8 = vadd.f32 %v1898_v5, %v5108_v11  ;;  %v1955_v11 = vld [vmem:[%s5714_s14 + $0x18] sm:$0xff] }
 0xc09   :  { %1914 = vadd.xlane.f32.xlu1 %v1913_v7  ;;  %4582 = vmatprep.subr.mxu1 %v1955_v11 }
 0xc0a   :  { %v1910_v10 = vsel %vm300_vm8, %v1906_v8, 0.0  ;;  %4583 = vmatpush3.msra.mxu1 %v1955_v11 }
 0xc0b   :  { %1911 = vadd.xlane.f32.xlu0 %v1910_v10  ;;  %4584 = vmatprep.subr.mxu1 %v1954_v25 }
 0xc0c   :  { %4585 = vmatpush3.msra.mxu1 %v1954_v25 }
 0xc0d   :  { %4586 = vmatprep.subr.mxu1 %v1953_v27 }
 0xc0e   :  { %4587 = vmatpush3.msra.mxu1 %v1953_v27 }
 0xc0f   :  { %4588 = vmatprep.subr.mxu1 %v1952_v28 }
 0xc10   :  { %4589 = vmatpush3.msra.mxu1 %v1952_v28 }
 0xc92   :  { %v1915_v12 = vpop.xlane.xlu1 %1914 }
 0xc93   :  { %v1917_v14 = vmul.f32 0.03125, %v1915_v12  ;;  %v4226_v12 = vld [vmem:[%s5719_s17] ss:$0 sm:$0xff] }
 0xc94   :  { %v1912_v15 = vpop.xlane.xlu0 %1911 }
 0xc95   :  { %v1916_v19 = vmul.f32 0.03125, %v1912_v15  ;;  %v1919_v21 = vsub.f32 %v1907_v6, %v1917_v14 }
 0xc97   :  { %v1918_v2 = vsub.f32 %v1906_v8, %v1916_v19  ;;  %v1921_v24 = vmul.f32 %v1919_v21, %v1919_v21 }
 0xc99   :  { %v1920_v22 = vmul.f32 %v1918_v2, %v1918_v2  ;;  %v1925_v13 = vsel %vm300_vm8, %v1921_v24, 0.0 }
 0xc9b   :  { %v1922_v17 = vsel %vm300_vm8, %v1920_v22, 0.0 }
 0xc9c   :  { %1923 = vadd.xlane.f32.xlu0 %v1922_v17 }
 0xca0   :  { %1926 = vadd.xlane.f32.xlu0 %v1925_v13 }
 0xd25   :  { %v1924_v29 = vpop.xlane.xlu0 %1923 }
 0xd26   :  { %v1928_v30 = vmul.f32 0.03125, %v1924_v29 }
 0xd28   :  { %v1930_v31 = vadd.f32 1e-12, %v1928_v30 }
 0xd29   :  { %v1927_v32 = vpop.xlane.xlu0 %1926 }
 0xd2a   :  { %4810 = vrsqrt.f32 %v1930_v31  ;;  %v1929_v33 = vmul.f32 0.03125, %v1927_v32 }
 0xd2c   :  { %v1931_v34 = vadd.f32 1e-12, %v1929_v33 }
 0xd2e   :  { %4812 = vrsqrt.f32 %v1931_v34  ;;  %v4234_v34 = vld [vmem:[%s5762_s8 + $0x38] sm:$0xff] }
 0xd2f   :  { %4612 = vmatprep.subr.mxu1 %v4234_v34 }
 0xd37   :  { %v4811_v9 = vpop.eup %4810 }
 0xd38   :  { %v1934_v35 = vmul.f32 %v4811_v9, %v1918_v2  ;;  %v4233_v9 = vld [vmem:[%s5762_s8 + $0x30] sm:$0xff] }
 0xd3a   :  { %v1942_v37 = vmul.f32 %v4221_v16, %v1934_v35  ;;  %v4231_v35 = vld [vmem:[%s5762_s8 + $0x20] sm:$0xff] }
 0xd3b   :  { %v4813_v38 = vpop.eup %4812 }
 0xd3c   :  { %v1935_v40 = vmul.f32 %v4813_v38, %v1919_v21  ;;  %v5330_v41 = vadd.f32 %v4222_v36, %v1942_v37 }
 0xd3e   :  { %v1943_v42 = vmul.f32 %v4221_v16, %v1935_v40  ;;  %4590 = vmatprep.mubr.msk.f32.mxu1 %vm300_vm8, %v5330_v41  ;;  %v4232_v16 = vld [vmem:[%s5762_s8 + $0x28] sm:$0xff] }
 0xd40   :  { %v5334_v43 = vadd.f32 %v4222_v36, %v1943_v42 }
 0xd42   :  { %4591 = vmatmul.mubr.msk.f32.vlgmr.msra.gmra.mxu1 %vm300_vm8, %v5334_v43 }
 0xd43   :  { %4613 = vmatpush3.msra.mxu1 %v4234_v34 }
 0xd44   :  { %4614 = vmatprep.subr.mxu1 %v4233_v9 }
 0xd45   :  { %4615 = vmatpush3.msra.mxu1 %v4233_v9 }
 0xd46   :  { %4616 = vmatprep.subr.mxu1 %v4232_v16 }
 0xd47   :  { %4617 = vmatpush3.msra.mxu1 %v4232_v16 }
 0xd48   :  { %4618 = vmatprep.subr.mxu1 %v4231_v35 }
 0xd49   :  { %4619 = vmatpush3.msra.mxu1 %v4231_v35 }
 0xd4a   :  { %4623 = vmatprep.subr.mxu1 %v4869_v26 }
 0xe02   :  { %v4592_v53 = vpop.f32.mrf.mxu1 }
 0xe03   :  { %v2041_v54 = vadd.f32 %v4592_v53, %v4223_v52 }
 0xe04   :  { %v2035_v55 = vpop.f32.mrf.mxu1 }
 0xe05   :  { %v2045_v20 = vmul.f32 %v2041_v54, %v2041_v54  ;;  %v2036_v56 = vadd.f32 %v4223_v52, %v2035_v55 }
 0xe07   :  { %v2047_v57 = vmul.f32 %v2045_v20, %v2041_v54  ;;  %v2044_v58 = vmul.f32 %v2036_v56, %v2036_v56 }
 0xe09   :  { %v2049_v59 = vmul.f32 0.044715, %v2047_v57  ;;  %v2046_v60 = vmul.f32 %v2044_v58, %v2036_v56 }
 0xe0b   :  { %v2051_v61 = vadd.f32 %v2049_v59, %v2041_v54  ;;  %v2048_v62 = vmul.f32 0.044715, %v2046_v60 }
 0xe0d   :  { %v2053_v63 = vmul.f32 0.7978846, %v2051_v61  ;;  %v2050_v0 = vadd.f32 %v2048_v62, %v2036_v56 }
 0xe0f   :  { %4814 = vtanh.f32 %v2053_v63  ;;  %v2052_v39 = vmul.f32 0.7978846, %v2050_v0 }
 0xe11   :  { %4816 = vtanh.f32 %v2052_v39 }
 0xe1c   :  { %v4815_v1 = vpop.eup %4814 }
 0xe1d   :  { %v2057_v3 = vadd.f32 1.0, %v4815_v1 }
 0xe1e   :  { %v4817_v4 = vpop.eup %4816 }
 0xe1f   :  { %v2056_v5 = vadd.f32 1.0, %v4817_v4  ;;  %v2059_v6 = vmul.f32 0.5, %v2057_v3 }
 0xe21   :  { %v2058_v7 = vmul.f32 0.5, %v2056_v5  ;;  %v2061_v10 = vmul.f32 %v2059_v6, %v2041_v54  ;;  %v4236_v54 = vld [vmem:[%s5711_s9 + $0x1] ss:$0 sm:$0xff]  ;;  %s5768_s9 = smov 72  }
 0xe23   :  { %v2060_v8 = vmul.f32 %v2058_v7, %v2036_v56 }
 0xe25   :  { %4609 = vmatprep.mubr.msk.f32.mxu0 %vm2077_vm13, %v2060_v8 }
 0xe26   :  { %4610 = vmatmul.mubr.msk.f32.vlgmr.msra.gmra.mxu0 %vm2077_vm13, %v2061_v10 }
 0xe27   :  { %4635 = vmatprep.mubr.msk.f32.mxu0 %vm4870_vm9, %v4869_v26 }
 0xee6   :  { %v4611_v14 = vpop.f32.mrf.mxu0 }
 0xee7   :  { %v2156_v15 = vadd.f32 %v4611_v14, %v4226_v12 }
 0xee8   :  { %v2150_v19 = vpop.f32.mrf.mxu0 }
 0xee9   :  { %v2151_v21 = vadd.f32 %v4226_v12, %v2150_v19  ;;  %v2160_v2 = vadd.f32 %v2156_v15, %v5334_v43 }
 0xeeb   :  { %v2166_v22 = vsel %vm300_vm8, %v2160_v2, 0.0  ;;  %v2159_v17 = vadd.f32 %v2151_v21, %v5330_v41 }
 0xeec   :  { %2167 = vadd.xlane.f32.xlu0 %v2166_v22 }
 0xeed   :  { %v2163_v24 = vsel %vm300_vm8, %v2159_v17, 0.0 }
 0xeee   :  { %2164 = vadd.xlane.f32.xlu1 %v2163_v24 }
 0xf75   :  { %v2168_v13 = vpop.xlane.xlu0 %2167 }
 0xf76   :  { %v2170_v11 = vmul.f32 0.03125, %v2168_v13 }
 0xf77   :  { %v2165_v25 = vpop.xlane.xlu1 %2164 }
 0xf78   :  { %v2172_v27 = vsub.f32 %v2160_v2, %v2170_v11  ;;  %v2169_v28 = vmul.f32 0.03125, %v2165_v25 }
 0xf7a   :  { %v2171_v29 = vsub.f32 %v2159_v17, %v2169_v28  ;;  %v2174_v30 = vmul.f32 %v2172_v27, %v2172_v27 }
 0xf7c   :  { %v2178_v31 = vsel %vm300_vm8, %v2174_v30, 0.0  ;;  %v2173_v32 = vmul.f32 %v2171_v29, %v2171_v29 }
 0xf7d   :  { %2179 = vadd.xlane.f32.xlu0 %v2178_v31 }
 0xf7e   :  { %v2175_v33 = vsel %vm300_vm8, %v2173_v32, 0.0 }
 0xf7f   :  { %2176 = vadd.xlane.f32.xlu1 %v2175_v33 }
0x1006   :  { %v2180_v36 = vpop.xlane.xlu0 %2179 }
0x1007   :  { %v2182_v37 = vmul.f32 0.03125, %v2180_v36 }
0x1008   :  { %v2177_v38 = vpop.xlane.xlu1 %2176 }
0x1009   :  { %v2184_v40 = vadd.f32 1e-12, %v2182_v37  ;;  %v2181_v41 = vmul.f32 0.03125, %v2177_v38 }
0x100b   :  { %4818 = vrsqrt.f32 %v2184_v40  ;;  %v2183_v42 = vadd.f32 1e-12, %v2181_v41 }
0x100d   :  { %4820 = vrsqrt.f32 %v2183_v42 }
0x1018   :  { %v4819_v43 = vpop.eup %4818 }
0x1019   :  { %v2188_v45 = vmul.f32 %v4819_v43, %v2172_v27 }
0x101a   :  { %v4821_v46 = vpop.eup %4820 }
0x101b   :  { %v2187_v47 = vmul.f32 %v4821_v46, %v2171_v29  ;;  %v2196_v48 = vmul.f32 %v4229_v44, %v2188_v45 }
0x101d   :  { %v2195_v50 = vmul.f32 %v4229_v44, %v2187_v47  ;;  %v5400_v52 = vadd.f32 %v4230_v49, %v2196_v48 }
0x101f   :  { %v5398_v51 = vadd.f32 %v4230_v49, %v2195_v50 }
0x1021   :  { %4620 = vmatprep.mubr.msk.f32.mxu1 %vm300_vm8, %v5398_v51 }
0x1022   :  { %4621 = vmatmul.mubr.msk.f32.vlgmr.msra.gmra.mxu1 %vm300_vm8, %v5400_v52 }
0x1023   :  { %4625 = vmatprep.mubr.msk.f32.mxu1 %vm4870_vm9, %v4869_v26 }
0x10e2   :  { %v4622_v53 = vpop.f32.mrf.mxu1 }
0x10e3   :  { %v5425_v56 = vadd.f32 %v4622_v53, %v4236_v54 }
0x10e4   :  { %v2290_v55 = vpop.f32.mrf.mxu1 }
0x10e5   :  { %v5411_v20 = vadd.f32 %v4236_v54, %v2290_v55 }
0x10e7   :  { %2467 = vrot.lane.b32.xlu0 %v5411_v20, %s4872_s29  ;;  %2300 = vrot.lane.b32.xlu1 %v5411_v20, %s4871_s3 }
0x10eb   :  { %2632 = vrot.lane.b32.xlu0 %v5411_v20, %s4876_s25  ;;  %2465 = vrot.lane.b32.xlu1 %v5411_v20, %s5765_s4 }
0x10ef   :  { %2799 = vrot.lane.b32.xlu0 %v5411_v20, %s5766_s1  ;;  %2634 = vrot.lane.b32.xlu1 %v5411_v20, %s5767_s30 }
0x10f3   :  { %3149 = vrot.lane.b32.xlu0 %v5425_v56, %s4872_s29  ;;  %2801 = vrot.lane.b32.xlu1 %v5411_v20, %s5768_s9  ;;  %s5770_s29 = smov 56  }
0x10f7   :  { %3316 = vrot.lane.b32.xlu0 %v5425_v56, %s5767_s30  ;;  %2982 = vrot.lane.b32.xlu1 %v5425_v56, %s4871_s3  ;;  %s5771_s3 = smov 40  }
0x10fb   :  { %3483 = vrot.lane.b32.xlu0 %v5425_v56, %s5768_s9  ;;  %3147 = vrot.lane.b32.xlu1 %v5425_v56, %s5765_s4 }
0x10ff   :  { %2389 = vrot.lane.b32.xlu0 %v5411_v20, %s5769_s2  ;;  %3314 = vrot.lane.b32.xlu1 %v5425_v56, %s4876_s25  ;;  %s5772_s25 = smov 48  }
0x1103   :  { %3481 = vrot.lane.b32.xlu1 %v5425_v56, %s5766_s1 }
0x1107   :  { %2556 = vrot.lane.b32.xlu1 %v5411_v20, %s5770_s29 }
0x1159   :  { %v2468_v57 = vpop.permute.xlu0 %2467  ;;  %v2301_v58 = vpop.permute.xlu1 %2300 }
0x115a   :  { %4624 = vmatpush3.xpose.msk.msra.mxu1 %vm442_vm10, %v2301_v58  ;;  %4634 = vmatpush3.xpose.msk.msra.mxu0 %vm442_vm10, %v2468_v57 }
0x115b   :  { %4643 = vmatprep.subr.mxu0 %v4869_v26  ;;  %4628 = vmatprep.subr.mxu1 %v4869_v26 }
0x115d   :  { %v2633_v59 = vpop.permute.xlu0 %2632  ;;  %4626 = vmatmul.mubr.msk.f32.vlgmr.msra.gmra.mxu1 %vm442_vm10, %v5411_v20  ;;  %v2466_v60 = vpop.permute.xlu1 %2465 }
0x115e   :  { %4636 = vmatmul.mubr.msk.f32.vlgmr.msra.gmra.mxu0 %vm442_vm10, %v2466_v60  ;;  %4630 = vmatprep.mubr.msk.f32.mxu1 %vm4870_vm9, %v4869_v26 }
0x115f   :  { %4645 = vmatprep.mubr.msk.f32.mxu0 %vm4870_vm9, %v4869_v26 }
0x1161   :  { %v2800_v61 = vpop.permute.xlu0 %2799  ;;  %v2635_v62 = vpop.permute.xlu1 %2634 }
0x1162   :  { %4644 = vmatpush3.xpose.msk.msra.mxu0 %vm442_vm10, %v2635_v62 }
0x1163   :  { %4653 = vmatprep.subr.mxu0 %v4869_v26 }
0x1165   :  { %v3150_v63 = vpop.permute.xlu0 %3149  ;;  %4646 = vmatmul.mubr.msk.f32.vlgmr.msra.gmra.mxu0 %vm442_vm10, %v2633_v59  ;;  %v2802_v0 = vpop.permute.xlu1 %2801 }
0x1166   :  { %4654 = vmatpush3.xpose.msk.msra.mxu0 %vm442_vm10, %v2802_v0  ;;  %4655 = vmatprep.mubr.msk.f32.mxu0 %vm4870_vm9, %v4869_v26 }
0x1167   :  { %4663 = vmatprep.subr.mxu0 %v4869_v26 }
0x1169   :  { %v3317_v39 = vpop.permute.xlu0 %3316  ;;  %4656 = vmatmul.mubr.msk.f32.vlgmr.msra.gmra.mxu0 %vm442_vm10, %v2800_v61  ;;  %v2983_v1 = vpop.permute.xlu1 %2982 }
0x116a   :  { %4664 = vmatpush3.xpose.msk.msra.mxu0 %vm442_vm10, %v2983_v1  ;;  %4665 = vmatprep.mubr.msk.f32.mxu0 %vm4870_vm9, %v4869_v26 }
0x116b   :  { %4673 = vmatprep.subr.mxu0 %v4869_v26 }
0x116d   :  { %v3484_v3 = vpop.permute.xlu0 %3483  ;;  %4666 = vmatmul.mubr.msk.f32.vlgmr.msra.gmra.mxu0 %vm442_vm10, %v5425_v56  ;;  %v3148_v4 = vpop.permute.xlu1 %3147 }
0x116e   :  { %4674 = vmatpush3.xpose.msk.msra.mxu0 %vm442_vm10, %v3150_v63  ;;  %4675 = vmatprep.mubr.msk.f32.mxu0 %vm4870_vm9, %v4869_v26 }
0x116f   :  { %4683 = vmatprep.subr.mxu0 %v4869_v26 }
0x1171   :  { %v2390_v5 = vpop.permute.xlu0 %2389  ;;  %4676 = vmatmul.mubr.msk.f32.vlgmr.msra.gmra.mxu0 %vm442_vm10, %v3148_v4  ;;  %v3315_v6 = vpop.permute.xlu1 %3314 }
0x1172   :  { %4629 = vmatpush3.msra.mxu1 %v2390_v5  ;;  %4684 = vmatpush3.xpose.msk.msra.mxu0 %vm442_vm10, %v3317_v39 }
0x1173   :  { %4685 = vmatprep.mubr.msk.f32.mxu0 %vm4870_vm9, %v4869_v26  ;;  %4693 = vmatprep.subr.mxu0 %v4869_v26 }
0x1174   :  { %4638 = vmatprep.subr.mxu1 %v4869_v26 }
0x1175   :  { %4686 = vmatmul.mubr.msk.f32.vlgmr.msra.gmra.mxu0 %vm442_vm10, %v3315_v6  ;;  %v3482_v7 = vpop.permute.xlu1 %3481 }
0x1176   :  { %4694 = vmatpush3.xpose.msk.msra.mxu0 %vm442_vm10, %v3484_v3  ;;  %4695 = vmatprep.mubr.msk.f32.mxu0 %vm4870_vm9, %v4869_v26 }
0x1179   :  { %4696 = vmatmul.mubr.msk.f32.vlgmr.msra.gmra.mxu0 %vm442_vm10, %v3482_v7  ;;  %v5507_v53 = vpop.permute.xlu1 %2556 }
0x121d   :  { %v2372_v8 = vpop.f32.mrf.mxu1 }
0x121e   :  { %v2376_v10 = vmul.f32 0.35355338, %v2372_v8  ;;  %v2539_v12 = vpop.f32.mrf.mxu0 }
0x121f   :  { %v2543_v14 = vmul.f32 0.35355338, %v2539_v12  ;;  %v4627_v15 = vpop.f32.mrf.mxu1 }
0x1220   :  { %v4637_v19 = vpop.f32.mrf.mxu0  ;;  %v2377_v21 = vadd.f32 %v2376_v10, %v5141_v23 }
0x1221   :  { %v2544_v2 = vadd.f32 %v2543_v14, %v5141_v23 }
0x1222   :  { %v2378_v22 = vsel %vm442_vm10, %v2377_v21, -inf }
0x1223   :  { %2379 = vmax.xlane.f32.xlu0 %v2378_v22  ;;  %v2545_v17 = vsel %vm442_vm10, %v2544_v2, -inf }
0x1224   :  { %2546 = vmax.xlane.f32.xlu1 %v2545_v17 }
0x1225   :  { %v2706_v24 = vpop.f32.mrf.mxu0 }
0x1226   :  { %v2710_v13 = vmul.f32 0.35355338, %v2706_v24 }
0x1227   :  { %v4647_v11 = vpop.f32.mrf.mxu0 }
0x1228   :  { %v2711_v25 = vadd.f32 %v2710_v13, %v5141_v23 }
0x1229   :  { %v2873_v27 = vpop.f32.mrf.mxu0 }
0x122a   :  { %v2877_v28 = vmul.f32 0.35355338, %v2873_v27  ;;  %v2712_v29 = vsel %vm442_vm10, %v2711_v25, -inf }
0x122b   :  { %2713 = vmax.xlane.f32.xlu0 %v2712_v29  ;;  %v4657_v30 = vpop.f32.mrf.mxu0 }
0x122c   :  { %v2878_v31 = vadd.f32 %v2877_v28, %v5141_v23 }
0x122d   :  { %v3054_v32 = vpop.f32.mrf.mxu0 }
0x122e   :  { %v3058_v33 = vmul.f32 0.35355338, %v3054_v32  ;;  %v2879_v34 = vsel %vm442_vm10, %v2878_v31, -inf }
0x122f   :  { %2880 = vmax.xlane.f32.xlu0 %v2879_v34  ;;  %v4667_v9 = vpop.f32.mrf.mxu0 }
0x1230   :  { %v3059_v16 = vadd.f32 %v3058_v33, %v5054_v18 }
0x1231   :  { %v3221_v35 = vpop.f32.mrf.mxu0 }
0x1232   :  { %v3225_v36 = vmul.f32 0.35355338, %v3221_v35  ;;  %v3060_v37 = vsel %vm442_vm10, %v3059_v16, -inf }
0x1233   :  { %3061 = vmax.xlane.f32.xlu1 %v3060_v37  ;;  %v4677_v38 = vpop.f32.mrf.mxu0 }
0x1234   :  { %v3226_v40 = vadd.f32 %v3225_v36, %v5054_v18 }
0x1235   :  { %v3388_v41 = vpop.f32.mrf.mxu0 }
0x1236   :  { %v3392_v42 = vmul.f32 0.35355338, %v3388_v41  ;;  %v3227_v23 = vsel %vm442_vm10, %v3226_v40, -inf }
0x1237   :  { %3228 = vmax.xlane.f32.xlu0 %v3227_v23  ;;  %v4687_v43 = vpop.f32.mrf.mxu0 }
0x1238   :  { %v3393_v44 = vadd.f32 %v3392_v42, %v5054_v18 }
0x1239   :  { %v3555_v45 = vpop.f32.mrf.mxu0 }
0x123a   :  { %v3559_v46 = vmul.f32 0.35355338, %v3555_v45  ;;  %v3394_v47 = vsel %vm442_vm10, %v3393_v44, -inf }
0x123b   :  { %3395 = vmax.xlane.f32.xlu1 %v3394_v47  ;;  %v4697_v48 = vpop.f32.mrf.mxu0 }
0x123c   :  { %v3560_v49 = vadd.f32 %v3559_v46, %v5054_v18 }
0x123e   :  { %v3561_v50 = vsel %vm442_vm10, %v3560_v49, -inf }
0x123f   :  { %3562 = vmax.xlane.f32.xlu0 %v3561_v50 }
0x124c   :  { %2890 = vrot.lane.b32.xlu1 %v5411_v20, %s5771_s3 }
0x1255   :  { %2723 = vrot.lane.b32.xlu0 %v5411_v20, %s5772_s25 }
0x12ac   :  { %v2380_v54 = vpop.xlane.xlu0 %2379 }
0x12ad   :  { %v2381_v55 = vsub.f32 %v2377_v21, %v2380_v54  ;;  %v2547_v57 = vpop.xlane.xlu1 %2546 }
0x12ae   :  { %v2548_v58 = vsub.f32 %v2544_v2, %v2547_v57 }
0x12af   :  { %v2382_v59 = vmul.f32 1.442695, %v2381_v55 }
0x12b0   :  { %v2549_v60 = vmul.f32 1.442695, %v2548_v58 }
0x12b1   :  { %4822 = vpow2.f32 %v2382_v59 }
0x12b2   :  { %4824 = vpow2.f32 %v2549_v60 }
0x12b4   :  { %v2714_v18 = vpop.xlane.xlu0 %2713 }
0x12b5   :  { %v2715_v61 = vsub.f32 %v2711_v25, %v2714_v18 }
0x12b7   :  { %v2716_v62 = vmul.f32 1.442695, %v2715_v61 }
0x12b8   :  { %v2881_v63 = vpop.xlane.xlu0 %2880 }
0x12b9   :  { %4826 = vpow2.f32 %v2716_v62  ;;  %v2882_v0 = vsub.f32 %v2878_v31, %v2881_v63 }
0x12bb   :  { %v2883_v39 = vmul.f32 1.442695, %v2882_v0 }
0x12bc   :  { %v3062_v10 = vpop.xlane.xlu1 %3061 }
0x12bd   :  { %4828 = vpow2.f32 %v2883_v39  ;;  %v3063_v12 = vsub.f32 %v3059_v16, %v3062_v10  ;;  %v4263_v10 = vld [vmem:[%s5712_s10 + $0x20] sm:$0xff] }
0x12be   :  { %v4823_v1 = vpop.eup %4822 }
0x12bf   :  { %v4825_v20 = vpop.eup %4824  ;;  %v2384_v3 = vsel %vm442_vm10, %v4823_v1, 0.0  ;;  %v3064_v21 = vmul.f32 1.442695, %v3063_v12 }
0x12c0   :  { %2385 = vadd.xlane.f32.xlu1 %v2384_v3  ;;  %v2551_v4 = vsel %vm442_vm10, %v4825_v20, 0.0  ;;  %v3229_v14 = vpop.xlane.xlu0 %3228 }
0x12c1   :  { %2552 = vadd.xlane.f32.xlu0 %v2551_v4  ;;  %v3230_v19 = vsub.f32 %v3226_v40, %v3229_v14  ;;  %4830 = vpow2.f32 %v3064_v21 }
0x12c3   :  { %v3231_v17 = vmul.f32 1.442695, %v3230_v19 }
0x12c4   :  { %v3396_v15 = vpop.xlane.xlu1 %3395 }
0x12c5   :  { %v3397_v2 = vsub.f32 %v3393_v44, %v3396_v15  ;;  %4832 = vpow2.f32 %v3231_v17 }
0x12c6   :  { %v4827_v5 = vpop.eup %4826 }
0x12c7   :  { %v2718_v6 = vsel %vm442_vm10, %v4827_v5, 0.0  ;;  %v3398_v24 = vmul.f32 1.442695, %v3397_v2 }
0x12c8   :  { %2719 = vadd.xlane.f32.xlu1 %v2718_v6  ;;  %v3563_v22 = vpop.xlane.xlu0 %3562  ;;  %v2891_v34 = vpop.permute.xlu1 %2890  ;;  %v4266_v6 = vld [vmem:[%s5712_s10 + $0x38] sm:$0xff] }
0x12c9   :  { %v3564_v13 = vsub.f32 %v3560_v49, %v3563_v22  ;;  %4834 = vpow2.f32 %v3398_v24  ;;  %4703 = vmatprep.subr.mxu0 %v4266_v6 }
0x12ca   :  { %v5512_v7 = vpop.eup %4828  ;;  %4704 = vmatpush3.msra.mxu0 %v4266_v6  ;;  %v4290_v6 = vld [vmem:[%s5717_s16 + $0x78] sm:$0xff] }
0x12cb   :  { %v2885_v8 = vsel %vm442_vm10, %v5512_v7, 0.0  ;;  %v3565_v11 = vmul.f32 1.442695, %v3564_v13 }
0x12cc   :  { %2886 = vadd.xlane.f32.xlu0 %v2885_v8  ;;  %v2724_v9 = vpop.permute.xlu0 %2723  ;;  %v4264_v8 = vld [vmem:[%s5712_s10 + $0x28] sm:$0xff] }
0x12cd   :  { %4836 = vpow2.f32 %v3565_v11 }
0x12ce   :  { %v4831_v25 = vpop.eup %4830 }
0x12cf   :  { %v3066_v28 = vsel %vm442_vm10, %v4831_v25, 0.0 }
0x12d2   :  { %v5520_v27 = vpop.eup %4832 }
0x12d3   :  { %v3233_v30 = vsel %vm442_vm10, %v5520_v27, 0.0 }
0x12d6   :  { %v5523_v29 = vpop.eup %4834 }
0x12d7   :  { %v3400_v31 = vsel %vm442_vm10, %v5523_v29, 0.0 }
0x12d9   :  { %3238 = vrot.lane.b32.xlu1 %v5425_v56, %s5770_s29 }
0x12da   :  { %v5529_v32 = vpop.eup %4836 }
0x12db   :  { %v3567_v33 = vsel %vm442_vm10, %v5529_v32, 0.0 }
0x12e2   :  { %3071 = vrot.lane.b32.xlu0 %v5425_v56, %s5769_s2 }
0x12fd   :  { %3067 = vadd.xlane.f32.xlu1 %v3066_v28 }
0x1301   :  { %3234 = vadd.xlane.f32.xlu0 %v3233_v30  ;;  %3401 = vadd.xlane.f32.xlu1 %v3400_v31 }
0x1305   :  { %3568 = vadd.xlane.f32.xlu1 %v3567_v33 }
0x1316   :  { %3572 = vrot.lane.b32.xlu1 %v5425_v56, %s5771_s3 }
0x1317   :  { %3405 = vrot.lane.b32.xlu0 %v5425_v56, %s5772_s25 }
0x1349   :  { %v2386_v16 = vpop.xlane.xlu1 %2385 }
0x134a   :  { %4838 = vrcp.f32 %v2386_v16  ;;  %v2553_v35 = vpop.xlane.xlu0 %2552 }
0x134b   :  { %4840 = vrcp.f32 %v2553_v35 }
0x1351   :  { %v2720_v36 = vpop.xlane.xlu1 %2719 }
0x1352   :  { %4842 = vrcp.f32 %v2720_v36 }
0x1355   :  { %v2887_v37 = vpop.xlane.xlu0 %2886  ;;  %v3239_v46 = vpop.permute.xlu1 %3238 }
0x1356   :  { %4844 = vrcp.f32 %v2887_v37 }
0x1357   :  { %v4839_v38 = vpop.eup %4838 }
0x1358   :  { %v2388_v40 = vmul.f32 %v4839_v38, %v4823_v1  ;;  %v4841_v41 = vpop.eup %4840 }
0x1359   :  { %v2555_v56 = vmul.f32 %v4841_v41, %v4825_v20  ;;  %v3072_v45 = vpop.permute.xlu0 %3071 }
0x135a   :  { %4631 = vmatmul.mubr.msk.f32.vlgmr.msra.gmra.mxu1 %vm442_vm10, %v2388_v40 }
0x135b   :  { %4639 = vmatpush3.msra.mxu1 %v5507_v53  ;;  %4640 = vmatprep.mubr.msk.f32.mxu1 %vm4870_vm9, %v4869_v26 }
0x135c   :  { %4648 = vmatprep.subr.mxu1 %v4869_v26 }
0x135e   :  { %4641 = vmatmul.mubr.msk.f32.vlgmr.msra.gmra.mxu1 %vm442_vm10, %v2555_v56 }
0x135f   :  { %v4843_v42 = vpop.eup %4842  ;;  %4649 = vmatpush3.msra.mxu1 %v2724_v9  ;;  %4650 = vmatprep.mubr.msk.f32.mxu1 %vm4870_vm9, %v4869_v26  ;;  %v4268_v9 = vld [vmem:[%s5713_s11 + $0x1] ss:$0 sm:$0xff] }
0x1360   :  { %4658 = vmatprep.subr.mxu1 %v4869_v26  ;;  %v2722_v23 = vmul.f32 %v4843_v42, %v4827_v5 }
0x1362   :  { %4651 = vmatmul.mubr.msk.f32.vlgmr.msra.gmra.mxu1 %vm442_vm10, %v2722_v23 }
0x1363   :  { %v4845_v43 = vpop.eup %4844  ;;  %4659 = vmatpush3.msra.mxu1 %v2891_v34  ;;  %4660 = vmatprep.mubr.msk.f32.mxu1 %vm4870_vm9, %v4869_v26 }
0x1364   :  { %4668 = vmatprep.subr.mxu1 %v4869_v26  ;;  %v2889_v44 = vmul.f32 %v4845_v43, %v5512_v7  ;;  %v4265_v7 = vld [vmem:[%s5712_s10 + $0x30] sm:$0xff] }
0x1365   :  { %4705 = vmatprep.subr.mxu0 %v4265_v7 }
0x1366   :  { %4661 = vmatmul.mubr.msk.f32.vlgmr.msra.gmra.mxu1 %vm442_vm10, %v2889_v44  ;;  %4706 = vmatpush3.msra.mxu0 %v4265_v7  ;;  %v4289_v7 = vld [vmem:[%s5717_s16 + $0x70] sm:$0xff] }
0x1367   :  { %4669 = vmatpush3.msra.mxu1 %v3072_v45  ;;  %4670 = vmatprep.mubr.msk.f32.mxu1 %vm4870_vm9, %v4869_v26 }
0x1368   :  { %4678 = vmatprep.subr.mxu1 %v4869_v26  ;;  %4707 = vmatprep.subr.mxu0 %v4264_v8 }
0x1369   :  { %4708 = vmatpush3.msra.mxu0 %v4264_v8  ;;  %v4288_v8 = vld [vmem:[%s5717_s16 + $0x68] sm:$0xff] }
0x136a   :  { %4709 = vmatprep.subr.mxu0 %v4263_v10 }
0x136b   :  { %4710 = vmatpush3.msra.mxu0 %v4263_v10  ;;  %v4287_v10 = vld [vmem:[%s5717_s16 + $0x60] sm:$0xff] }
0x136c   :  { %4725 = vmatprep.subr.mxu0 %v4290_v6 }
0x1386   :  { %v3068_v47 = vpop.xlane.xlu1 %3067 }
0x1387   :  { %4846 = vrcp.f32 %v3068_v47 }
0x138a   :  { %v3235_v48 = vpop.xlane.xlu0 %3234  ;;  %v3402_v49 = vpop.xlane.xlu1 %3401 }
0x138b   :  { %4848 = vrcp.f32 %v3235_v48 }
0x138c   :  { %4850 = vrcp.f32 %v3402_v49 }
0x138e   :  { %v3569_v50 = vpop.xlane.xlu1 %3568  ;;  %v3406_v59 = vpop.permute.xlu0 %3405 }
0x138f   :  { %4852 = vrcp.f32 %v3569_v50  ;;  %v4277_v50 = vld [vmem:[%s5714_s14 + $0x30] sm:$0xff] }
0x1392   :  { %v3573_v61 = vpop.permute.xlu1 %3572 }
0x1394   :  { %v4847_v53 = vpop.eup %4846 }
0x1395   :  { %v3070_v54 = vmul.f32 %v4847_v53, %v4831_v25  ;;  %v4276_v53 = vld [vmem:[%s5714_s14 + $0x28] sm:$0xff] }
0x1397   :  { %4671 = vmatmul.mubr.msk.f32.vlgmr.msra.gmra.mxu1 %vm442_vm10, %v3070_v54  ;;  %v4275_v54 = vld [vmem:[%s5714_s14 + $0x20] sm:$0xff] }
0x1398   :  { %v4849_v55 = vpop.eup %4848  ;;  %4679 = vmatpush3.msra.mxu1 %v3239_v46  ;;  %4680 = vmatprep.mubr.msk.f32.mxu1 %vm4870_vm9, %v4869_v26 }
0x1399   :  { %4688 = vmatprep.subr.mxu1 %v4869_v26  ;;  %v3237_v57 = vmul.f32 %v4849_v55, %v5520_v27  ;;  %v4851_v58 = vpop.eup %4850 }
0x139a   :  { %v3404_v60 = vmul.f32 %v4851_v58, %v5523_v29 }
0x139b   :  { %4681 = vmatmul.mubr.msk.f32.vlgmr.msra.gmra.mxu1 %vm442_vm10, %v3237_v57 }
0x139c   :  { %4689 = vmatpush3.msra.mxu1 %v3406_v59  ;;  %4690 = vmatprep.mubr.msk.f32.mxu1 %vm4870_vm9, %v4869_v26  ;;  %v4853_v18 = vpop.eup %4852 }
0x139d   :  { %4698 = vmatprep.subr.mxu1 %v4869_v26  ;;  %v3571_v62 = vmul.f32 %v4853_v18, %v5529_v32 }
0x139f   :  { %4691 = vmatmul.mubr.msk.f32.vlgmr.msra.gmra.mxu1 %vm442_vm10, %v3404_v60 }
0x13a0   :  { %4699 = vmatpush3.msra.mxu1 %v3573_v61  ;;  %4700 = vmatprep.mubr.msk.f32.mxu1 %vm4870_vm9, %v4869_v26 }
0x13a3   :  { %4701 = vmatmul.mubr.msk.f32.vlgmr.msra.gmra.mxu1 %vm442_vm10, %v3571_v62  ;;  %v4273_v62 = vld [vmem:[%s5715_s12 + $0x1] ss:$0 sm:$0xff] }
0x141a   :  { %v2461_v63 = vpop.f32.mrf.mxu1 }
0x141c   :  { %v4632_v0 = vpop.f32.mrf.mxu1 }
0x141d   :  { %v4274_v0 = vld [vmem:[%s5716_s13 + $0x1] ss:$0 sm:$0xff] }
0x141e   :  { %v2628_v39 = vpop.f32.mrf.mxu1 }
0x141f   :  { %2967 = vrot.lane.b32.xlu0 %v2628_v39, %s4882_s26 }
0x1420   :  { %v4642_v1 = vpop.f32.mrf.mxu1 }
0x1422   :  { %v2795_v20 = vpop.f32.mrf.mxu1 }
0x1423   :  { %2971 = vrot.lane.b32.xlu1 %v2795_v20, %s4883_s27 }
0x1424   :  { %v4652_v3 = vpop.f32.mrf.mxu1 }
0x1426   :  { %v2962_v4 = vpop.f32.mrf.mxu1 }
0x1427   :  { %2975 = vrot.lane.b32.xlu1 %v2962_v4, %s4884_s28 }
0x1428   :  { %v4662_v5 = vpop.f32.mrf.mxu1 }
0x1457   :  { %v3143_v12 = vpop.f32.mrf.mxu1 }
0x1459   :  { %v4672_v14 = vpop.f32.mrf.mxu1 }
0x145a   :  { %v4285_v14 = vld [vmem:[%s5717_s16 + $0x50] sm:$0xff] }
0x145b   :  { %v3310_v15 = vpop.f32.mrf.mxu1 }
0x145c   :  { %3649 = vrot.lane.b32.xlu0 %v3310_v15, %s4882_s26  ;;  %v4284_v15 = vld [vmem:[%s5717_s16 + $0x48] sm:$0xff] }
0x145d   :  { %v4682_v19 = vpop.f32.mrf.mxu1 }
0x145e   :  { %v4283_v19 = vld [vmem:[%s5717_s16 + $0x40] sm:$0xff] }
0x145f   :  { %v3477_v21 = vpop.f32.mrf.mxu1 }
0x1460   :  { %3653 = vrot.lane.b32.xlu0 %v3477_v21, %s4883_s27  ;;  %v4280_v21 = vld [vmem:[%s5718_s15 + $0x1] ss:$0 sm:$0xff] }
0x1461   :  { %v4692_v2 = vpop.f32.mrf.mxu1 }
0x1463   :  { %v3644_v22 = vpop.f32.mrf.mxu1 }
0x1464   :  { %3657 = vrot.lane.b32.xlu1 %v3644_v22, %s4884_s28 }
0x1465   :  { %v4702_v17 = vpop.f32.mrf.mxu1 }
0x1491   :  { %v2968_v24 = vpop.permute.xlu0 %2967 }
0x1492   :  { %v2978_v11 = vsel %vm442_vm10, %v2461_v63, %v2968_v24 }
0x1495   :  { %v2972_v13 = vpop.permute.xlu1 %2971 }
0x1496   :  { %v2979_v25 = vsel %vm1124_vm11, %v2978_v11, %v2972_v13 }
0x1499   :  { %v2976_v27 = vpop.permute.xlu1 %2975 }
0x149a   :  { %v2980_v28 = vsel %vm1126_vm12, %v2979_v25, %v2976_v27 }
0x149b   :  { %4711 = vmatprep.mubr.msk.f32.mxu0 %vm300_vm8, %v2980_v28 }
0x14ce   :  { %v3650_v29 = vpop.permute.xlu0 %3649 }
0x14cf   :  { %v3660_v31 = vsel %vm442_vm10, %v3143_v12, %v3650_v29  ;;  %v4286_v12 = vld [vmem:[%s5717_s16 + $0x58] sm:$0xff] }
0x14d2   :  { %v3654_v30 = vpop.permute.xlu0 %3653 }
0x14d3   :  { %v3661_v32 = vsel %vm1124_vm11, %v3660_v31, %v3654_v30 }
0x14d6   :  { %v3658_v33 = vpop.permute.xlu1 %3657 }
0x14d7   :  { %v3662_v34 = vsel %vm1126_vm12, %v3661_v32, %v3658_v33 }
0x14d8   :  { %4712 = vmatmul.mubr.msk.f32.vlgmr.msra.gmra.mxu0 %vm300_vm8, %v3662_v34 }
0x14d9   :  { %4726 = vmatpush3.msra.mxu0 %v4290_v6 }
0x14da   :  { %4727 = vmatprep.subr.mxu0 %v4289_v7 }
0x14db   :  { %4728 = vmatpush3.msra.mxu0 %v4289_v7 }
0x14dc   :  { %4729 = vmatprep.subr.mxu0 %v4288_v8 }
0x14dd   :  { %4730 = vmatpush3.msra.mxu0 %v4288_v8 }
0x14de   :  { %4731 = vmatprep.subr.mxu0 %v4287_v10 }
0x14df   :  { %4732 = vmatpush3.msra.mxu0 %v4287_v10 }
0x14e0   :  { %4733 = vmatprep.subr.mxu0 %v4286_v12 }
0x14e1   :  { %4734 = vmatpush3.msra.mxu0 %v4286_v12 }
0x14e2   :  { %4735 = vmatprep.subr.mxu0 %v4285_v14 }
0x14e3   :  { %4736 = vmatpush3.msra.mxu0 %v4285_v14 }
0x14e4   :  { %4737 = vmatprep.subr.mxu0 %v4284_v15 }
0x14e5   :  { %4738 = vmatpush3.msra.mxu0 %v4284_v15 }
0x14e6   :  { %4739 = vmatprep.subr.mxu0 %v4283_v19 }
0x14e7   :  { %4740 = vmatpush3.msra.mxu0 %v4283_v19 }
0x1598   :  { %v4713_v16 = vpop.f32.mrf.mxu0 }
0x1599   :  { %v3754_v35 = vadd.f32 %v4713_v16, %v4268_v9 }
0x159a   :  { %v3748_v36 = vpop.f32.mrf.mxu0 }
0x159b   :  { %v3758_v37 = vadd.f32 %v3754_v35, %v5400_v52  ;;  %v3749_v38 = vadd.f32 %v4268_v9, %v3748_v36 }
0x159d   :  { %v3757_v40 = vadd.f32 %v3749_v38, %v5398_v51  ;;  %v3766_v41 = vsel %vm300_vm8, %v3758_v37, 0.0  ;;  %v4278_v51 = vld [vmem:[%s5714_s14 + $0x38] sm:$0xff] }
0x159e   :  { %3767 = vadd.xlane.f32.xlu1 %v3766_v41  ;;  %4714 = vmatprep.subr.mxu1 %v4278_v51  ;;  %v4292_v41 = vld [vmem:[%s5719_s17 + $0x1] ss:$0 sm:$0xff] }
0x159f   :  { %v3763_v56 = vsel %vm300_vm8, %v3757_v40, 0.0  ;;  %4715 = vmatpush3.msra.mxu1 %v4278_v51 }
0x15a0   :  { %3764 = vadd.xlane.f32.xlu0 %v3763_v56  ;;  %4716 = vmatprep.subr.mxu1 %v4277_v50 }
0x15a1   :  { %4717 = vmatpush3.msra.mxu1 %v4277_v50 }
0x15a2   :  { %4718 = vmatprep.subr.mxu1 %v4276_v53 }
0x15a3   :  { %4719 = vmatpush3.msra.mxu1 %v4276_v53 }
0x15a4   :  { %4720 = vmatprep.subr.mxu1 %v4275_v54 }
0x15a5   :  { %4721 = vmatpush3.msra.mxu1 %v4275_v54 }
0x15a6   :  { %4744 = vmatprep.subr.mxu1 %v4869_v26 }
0x1627   :  { %v3768_v42 = vpop.xlane.xlu1 %3767 }
0x1628   :  { %v3770_v23 = vmul.f32 0.03125, %v3768_v42 }
0x1629   :  { %v3765_v43 = vpop.xlane.xlu0 %3764 }
0x162a   :  { %v3769_v44 = vmul.f32 0.03125, %v3765_v43  ;;  %v3772_v45 = vsub.f32 %v3758_v37, %v3770_v23 }
0x162c   :  { %v3771_v46 = vsub.f32 %v3757_v40, %v3769_v44  ;;  %v3774_v49 = vmul.f32 %v3772_v45, %v3772_v45 }
0x162e   :  { %v3773_v47 = vmul.f32 %v3771_v46, %v3771_v46  ;;  %v3778_v52 = vsel %vm300_vm8, %v3774_v49, 0.0 }
0x1630   :  { %v3775_v48 = vsel %vm300_vm8, %v3773_v47, 0.0 }
0x1631   :  { %3776 = vadd.xlane.f32.xlu0 %v3775_v48 }
0x1635   :  { %3779 = vadd.xlane.f32.xlu0 %v3778_v52 }
0x16ba   :  { %v3777_v55 = vpop.xlane.xlu0 %3776 }
0x16bb   :  { %v3781_v57 = vmul.f32 0.03125, %v3777_v55 }
0x16bd   :  { %v3783_v58 = vadd.f32 1e-12, %v3781_v57 }
0x16be   :  { %v3780_v59 = vpop.xlane.xlu0 %3779 }
0x16bf   :  { %4854 = vrsqrt.f32 %v3783_v58  ;;  %v3782_v60 = vmul.f32 0.03125, %v3780_v59  ;;  %v4071_v59 = vld [vmem:[%s5722_s20 + $0x18] sm:$0xff] }
0x16c1   :  { %v3784_v18 = vadd.f32 1e-12, %v3782_v60  ;;  %v4070_v60 = vld [vmem:[%s5722_s20 + $0x10] sm:$0xff] }
0x16c3   :  { %4856 = vrsqrt.f32 %v3784_v18  ;;  %v4069_v18 = vld [vmem:[%s5722_s20 + $0x8] sm:$0xff] }
0x16cc   :  { %v4855_v61 = vpop.eup %4854 }
0x16cd   :  { %v3787_v63 = vmul.f32 %v4855_v61, %v3771_v46  ;;  %v4068_v61 = vld [vmem:[%s5722_s20] sm:$0xff] }
0x16cf   :  { %v3795_v39 = vmul.f32 %v4273_v62, %v3787_v63 }
0x16d0   :  { %v4857_v1 = vpop.eup %4856 }
0x16d1   :  { %v3788_v20 = vmul.f32 %v4857_v1, %v3772_v45  ;;  %v5624_v3 = vadd.f32 %v4274_v0, %v3795_v39 }
0x16d3   :  { %v3796_v4 = vmul.f32 %v4273_v62, %v3788_v20  ;;  %4722 = vmatprep.mubr.msk.f32.mxu1 %vm300_vm8, %v5624_v3 }
0x16d5   :  { %v3804_v5 = vadd.f32 %v4274_v0, %v3796_v4  ;;  %v4297_v4 = vld [vmem:[%s5720_s18 + $0x1] ss:$0 sm:$0xff] }
0x16d7   :  { %4723 = vmatmul.mubr.msk.f32.vlgmr.msra.gmra.mxu1 %vm300_vm8, %v3804_v5 }
0x16d8   :  { %4752 = vmatprep.mubr.msk.f32.mxu1 %vm4870_vm9, %v4869_v26  ;;  %4745 = vmatpush3.msra.mxu1 %v4071_v59 }
0x16d9   :  { %4746 = vmatprep.subr.mxu1 %v4869_v26 }
0x16da   :  { %4747 = vmatpush3.msra.mxu1 %v4070_v60 }
0x16db   :  { %4748 = vmatprep.subr.mxu1 %v4869_v26 }
0x16dc   :  { %4749 = vmatpush3.msra.mxu1 %v4069_v18 }
0x16dd   :  { %4750 = vmatprep.subr.mxu1 %v4869_v26  ;;  %v4298_v26 = vld [vmem:[%s5721_s19 + $0x1] ss:$0 sm:$0xff] }
0x16de   :  { %4751 = vmatpush3.msra.mxu1 %v4068_v61 }
0x1797   :  { %v4724_v2 = vpop.f32.mrf.mxu1 }
0x1798   :  { %v3896_v22 = vadd.f32 %v4724_v2, %v4280_v21  ;;  %v4299_v2 = vld [vmem:[%s5724_s21] ss:$0 sm:$0xff] }
0x1799   :  { %v3890_v17 = vpop.f32.mrf.mxu1 }
0x179a   :  { %v3900_v24 = vmul.f32 %v3896_v22, %v3896_v22  ;;  %v3891_v13 = vadd.f32 %v4280_v21, %v3890_v17  ;;  %v29_v21 = vstv %s5723_s23 }
0x179b   :  { %30 = vst [vmem:[#allocation2] sm:$0x1] %v29_v21 }
0x179c   :  { %v3902_v11 = vmul.f32 %v3900_v24, %v3896_v22  ;;  %v3899_v25 = vmul.f32 %v3891_v13, %v3891_v13 }
0x179e   :  { %v3904_v27 = vmul.f32 0.044715, %v3902_v11  ;;  %v3901_v28 = vmul.f32 %v3899_v25, %v3891_v13 }
0x17a0   :  { %v3906_v29 = vadd.f32 %v3904_v27, %v3896_v22  ;;  %v3903_v30 = vmul.f32 0.044715, %v3901_v28 }
0x17a2   :  { %v3908_v31 = vmul.f32 0.7978846, %v3906_v29  ;;  %v3905_v32 = vadd.f32 %v3903_v30, %v3891_v13  ;;  %v4302_v28 = vld [vmem:[#allocation2] ss:$0 sm:$0xff] }
0x17a4   :  { %4858 = vtanh.f32 %v3908_v31  ;;  %v3907_v33 = vmul.f32 0.7978846, %v3905_v32 }
0x17a6   :  { %4860 = vtanh.f32 %v3907_v33 }
0x17b1   :  { %v4859_v34 = vpop.eup %4858 }
0x17b2   :  { %v3912_v9 = vadd.f32 1.0, %v4859_v34 }
0x17b3   :  { %v4861_v16 = vpop.eup %4860 }
0x17b4   :  { %v3911_v35 = vadd.f32 1.0, %v4861_v16  ;;  %v3914_v36 = vmul.f32 0.5, %v3912_v9 }
0x17b6   :  { %v3913_v37 = vmul.f32 0.5, %v3911_v35  ;;  %v3916_v40 = vmul.f32 %v3914_v36, %v3896_v22 }
0x17b8   :  { %v3915_v38 = vmul.f32 %v3913_v37, %v3891_v13  ;;  %v4301_v13 = vld [vmem:[%s5725_s22] ss:$0 sm:$0xff] }
0x17ba   :  { %4741 = vmatprep.mubr.msk.f32.mxu0 %vm2077_vm13, %v3915_v38 }
0x17bb   :  { %4742 = vmatmul.mubr.msk.f32.vlgmr.msra.gmra.mxu0 %vm2077_vm13, %v3916_v40 }
0x187b   :  { %v4743_v56 = vpop.f32.mrf.mxu0 }
0x187c   :  { %v4012_v42 = vadd.f32 %v4743_v56, %v4292_v41 }
0x187d   :  { %v4006_v23 = vpop.f32.mrf.mxu0 }
0x187e   :  { %v4016_v43 = vadd.f32 %v4012_v42, %v3804_v5  ;;  %v4007_v44 = vadd.f32 %v4292_v41, %v4006_v23 }
0x1880   :  { %v4015_v45 = vadd.f32 %v4007_v44, %v5624_v3  ;;  %v4024_v46 = vsel %vm300_vm8, %v4016_v43, 0.0 }
0x1881   :  { %4025 = vadd.xlane.f32.xlu1 %v4024_v46 }
0x1882   :  { %v4021_v47 = vsel %vm300_vm8, %v4015_v45, 0.0 }
0x1883   :  { %4022 = vadd.xlane.f32.xlu0 %v4021_v47 }
0x190a   :  { %v4026_v48 = vpop.xlane.xlu1 %4025 }
0x190b   :  { %v4028_v49 = vmul.f32 0.03125, %v4026_v48 }
0x190c   :  { %v4023_v52 = vpop.xlane.xlu0 %4022 }
0x190d   :  { %v4030_v51 = vsub.f32 %v4016_v43, %v4028_v49  ;;  %v4027_v50 = vmul.f32 0.03125, %v4023_v52 }
0x190f   :  { %v4029_v53 = vsub.f32 %v4015_v45, %v4027_v50  ;;  %v4032_v54 = vmul.f32 %v4030_v51, %v4030_v51 }
0x1911   :  { %v4036_v55 = vsel %vm300_vm8, %v4032_v54, 0.0  ;;  %v4031_v57 = vmul.f32 %v4029_v53, %v4029_v53 }
0x1912   :  { %4037 = vadd.xlane.f32.xlu1 %v4036_v55 }
0x1913   :  { %v4033_v58 = vsel %vm300_vm8, %v4031_v57, 0.0 }
0x1914   :  { %4034 = vadd.xlane.f32.xlu0 %v4033_v58 }
0x199b   :  { %v4038_v62 = vpop.xlane.xlu1 %4037 }
0x199c   :  { %v4040_v63 = vmul.f32 0.03125, %v4038_v62 }
0x199d   :  { %v4035_v0 = vpop.xlane.xlu0 %4034 }
0x199e   :  { %v4042_v39 = vadd.f32 1e-12, %v4040_v63  ;;  %v4039_v1 = vmul.f32 0.03125, %v4035_v0 }
0x19a0   :  { %4862 = vrsqrt.f32 %v4042_v39  ;;  %v4041_v20 = vadd.f32 1e-12, %v4039_v1 }
0x19a2   :  { %4864 = vrsqrt.f32 %v4041_v20 }
0x19ad   :  { %v4863_v3 = vpop.eup %4862 }
0x19ae   :  { %v4046_v5 = vmul.f32 %v4863_v3, %v4030_v51 }
0x19af   :  { %v4865_v6 = vpop.eup %4864 }
0x19b0   :  { %v4045_v7 = vmul.f32 %v4865_v6, %v4029_v53  ;;  %v4054_v8 = vmul.f32 %v4297_v4, %v4046_v5 }
0x19b2   :  { %v4053_v10 = vmul.f32 %v4297_v4, %v4045_v7  ;;  %v4062_v12 = vadd.f32 %v4298_v26, %v4054_v8 }
0x19b4   :  { %v4061_v14 = vadd.f32 %v4298_v26, %v4053_v10  ;;  %v4064_v15 = vrot.slane %v4062_v12, 7 }
0x19b6   :  { %v4067_v19 = vsel %vm4066_vm14, %v4061_v14, %v4064_v15 }
0x19b7   :  { %4753 = vmatmul.mubr.msk.f32.vlgmr.msra.gmra.mxu1 %vm300_vm8, %v4067_v19 }
0x1a77   :  { %v4148_v22 = vpop.f32.mrf.mxu1 }
0x1a78   :  { %v4149_v17 = vadd.f32 %v4299_v2, %v4148_v22 }
0x1a79   :  { %v4754_v24 = vpop.f32.mrf.mxu1 }
0x1a7a   :  { %4866 = vtanh.f32 %v4149_v17 }
0x1a87   :  { %v4867_v11 = vpop.eup %4866 }
0x1a88   :  { %v4160_v25 = vmul.f32 %v4867_v11, %v4301_v13 }
0x1a8a   :  { %v4162_v27 = vsel %vm4161_vm15, %v4160_v25, 0.0 }
0x1a8b   :  { %4163 = vadd.xlane.f32.xlu1 %v4162_v27 }
0x1b14   :  { %v4164_v29 = vpop.xlane.xlu1 %4163 }
0x1b15   :  { %v4172_v30 = vadd.f32 %v4302_v28, %v4164_v29 }
0x1b17   :  { %4174 = vst.msk [vmem:[%s5726_s24] sm:$0x3] %vm4173_vm0, %v4172_v30 }

</bundles_post_ra>
